<compile_context>
chip_gen: v6e
topology: v6e:2x2x1
jax: 0.10.0
libtpu: 0.0.40
codegen_flags: <defaults>
</compile_context>

<pallas_src>
import functools

import jax
import jax.numpy as jnp
from jax.experimental import pallas as pl
from jax.experimental.pallas import tpu as pltpu


def _elu(x):
    # exp-based ELU; the clamp keeps the unselected branch finite.
    return jnp.where(x > 0, x, jnp.exp(jnp.minimum(x, 0.0)) - 1.0)


def _round_up(v, m):
    return -(-v // m) * m


# ----------------------------------------------------------------------------
# Fused kernel: conv3x3 (+bias, ELU) -> FC readout (+bias) -> elu(.+off)+1
# Grid: (num_batch_tiles, num_N_tiles).  Features for batch tile i are
# computed once (at j == 0) into a VMEM scratch and reused for every readout
# tile j (j is the inner, "arbitrary" axis so the scratch lifetime is valid).
# ----------------------------------------------------------------------------
def _encoder_fused_kernel(x_ref, wconv_ref, bconv_ref, wro_ref, bro_ref,
                          o_ref, feat_ref, xs_ref, *,
                          bt, C_pad, C_core, Wp, Lw_pad, elu_offset):
    j = pl.program_id(1)

    # ---- core: fused 3x3 conv (single K = 9*C_pad matmul per sample) ----
    @pl.when(j == 0)
    def _():
        for s in range(bt):
            # Stage the 9 shifted slabs into one (9*C_pad, Lw_pad) operand.
            # Sublane offsets t*C_pad are multiples of 8 -> aligned stores.
            for dy in range(3):
                for dx in range(3):
                    t = dy * 3 + dx
                    off = dy * Wp + dx
                    xs_ref[pl.ds(t * C_pad, C_pad), :] = (
                        x_ref[s, :, pl.ds(off, Lw_pad)])
            conv = jnp.dot(wconv_ref[...], xs_ref[...],
                           preferred_element_type=jnp.float32)  # (C_core, Lw_pad)
            conv = _elu(conv + bconv_ref[...])
            # Flatten (c, p) -> c*Lw_pad + p into the per-sample feature row so
            # the readout becomes ONE (bt, K) @ (K, tn) contraction.  Paid only
            # once per batch tile (j == 0), reused for every readout tile.
            for c in range(C_core):
                feat_ref[pl.ds(s, 1), pl.ds(c * Lw_pad, Lw_pad)] = conv[c:c + 1, :]

    # ---- readout tile j: single (bt, K) @ (K, tn) matmul + Encoder epilogue ----
    feat = feat_ref[...].astype(jnp.bfloat16)                    # (bt, K)
    out = jnp.dot(feat, wro_ref[...],                            # (bt, tn) f32
                  preferred_element_type=jnp.float32)
    z = out + bro_ref[...] + elu_offset
    o_ref[0] = _elu(z) + 1.0


# ----------------------------------------------------------------------------
# Encoder forward
# ----------------------------------------------------------------------------
def encoder_forward(params, x, elu_offset, repeat_channel_dim=None):
    """Mirrors Encoder.forward (standard return path)."""
    conv_w = params["conv_w"]            # (C_core, C_in_total, 3, 3)
    conv_b = params["conv_b"]            # (C_core,)
    ro_w = params["readout_w"]           # (C_core*H*W, N)
    ro_b = params["readout_b"]           # (N,)

    if repeat_channel_dim is not None:
        # Encoder: x = x.repeat(1, r, 1, 1); x[:, 1:, ...] = 0
        # Only channel 0 is ever non-zero -> use channel 0 and the matching
        # conv-weight slice (same math, no wasted HBM traffic / FLOPs).
        assert conv_w.shape[1] == x.shape[1] * repeat_channel_dim
        x = x[:, :1]
        conv_w = conv_w[:, :1]

    B, C_in, H, W = x.shape
    C_core = conv_w.shape[0]
    N = ro_w.shape[1]

    Wp = W + 2                           # padded width (wide core layout)
    Lw = H * Wp                          # wide flattened core length / channel
    Lw_pad = _round_up(Lw, 128)          # lane-aligned -> flatten is free
    C_pad = _round_up(C_in, 8)           # sublane-aligned conv-K slabs
    K9 = 9 * C_pad                       # fused conv contraction depth
    K = C_core * Lw_pad                  # readout contraction depth
    Lp_ext = _round_up(Lw_pad + 2 * Wp + 2, 128)   # flat input incl. shift room
    n_pad = _round_up(N, 128)            # lane-dense output width

    # Batch tile: whole batch per step when small (wro streamed once).
    bt = B if B <= 8 else next(d for d in (8, 4, 2, 1) if B % d == 0)
    nb = B // bt

    # tn pick under a conservative VMEM budget (double-buffered), safe for
    # v7x's 64 MiB VMEM; v5e/v6e have more headroom but this already fits.
    budget = 40 * 1024 * 1024
    fixed = (2 * bt * C_pad * Lp_ext * 2          # x block (dbl-buffered)
             + C_core * K9 * 2 + C_core * 4       # conv weights/bias
             + bt * K * 4 + K9 * Lw_pad * 2)      # feat + staging scratch
    tn = 128
    for cand in (512, 256, 128):
        if n_pad % cand == 0 and fixed + 2 * (K * cand * 2 + cand * 4 + bt * cand * 4) <= budget:
            tn = cand
            break
    nt = n_pad // tn
    vmem_need = fixed + 2 * (K * tn * 2 + tn * 4 + bt * tn * 4)
    vmem_limit = int(min(max(32 * 1024 * 1024, vmem_need + (8 << 20)),
                         64 * 1024 * 1024))

    # ---- layout prep (plain JAX, once per call) ----
    # SAME-pad spatially, pad channels to C_pad, flatten (H+2, Wp) and extend
    # the flat axis so every shifted slice stays in bounds; bf16 for the MXU.
    xp = jnp.pad(x, ((0, 0), (0, C_pad - C_in), (1, 1), (1, 1)))
    xf = xp.reshape(B, C_pad, (H + 2) * Wp)
    xf = jnp.pad(xf, ((0, 0), (0, 0), (0, Lp_ext - (H + 2) * Wp))).astype(jnp.bfloat16)

    # Conv weight: (C_core, C_in, 3, 3) -> (C_core, 9*C_pad), column order
    # t*C_pad + c_in matching the in-kernel staging order.
    wconv = jnp.transpose(conv_w, (0, 2, 3, 1))                  # (C_core,3,3,C_in)
    wconv = jnp.pad(wconv, ((0, 0), (0, 0), (0, 0), (0, C_pad - C_in)))
    wconv = wconv.reshape(C_core, K9).astype(jnp.bfloat16)
    bconv = conv_b.reshape(C_core, 1).astype(jnp.float32)

    # Readout weight re-indexed to the flat wide layout (K = C_core*Lw_pad):
    # zero rows at halo / pad positions neutralize the garbage feature columns.
    wro = ro_w.reshape(C_core, H, W, N)
    wro = jnp.pad(wro, ((0, 0), (0, 0), (0, Wp - W), (0, n_pad - N)))
    wro = wro.reshape(C_core, Lw, n_pad)
    wro = jnp.pad(wro, ((0, 0), (0, Lw_pad - Lw), (0, 0)))
    wro = wro.reshape(K, n_pad).astype(jnp.bfloat16)
    bro = jnp.pad(ro_b, (0, n_pad - N)).reshape(1, n_pad).astype(jnp.float32)

    kernel = functools.partial(
        _encoder_fused_kernel, bt=bt, C_pad=C_pad, C_core=C_core,
        Wp=Wp, Lw_pad=Lw_pad, elu_offset=float(elu_offset))

    flops = B * 2 * C_core * K9 * Lw_pad + B * 2 * K * n_pad
    bytes_accessed = (xf.size * 2 + wconv.size * 2 + bconv.size * 4
                      + nb * wro.size * 2 + nb * bro.size * 4 + B * n_pad * 4)

    # TODO(synk): for very large readouts (K*tn tiles exceeding the VMEM
    #             budget) the K dimension would also need grid tiling.
    out = pl.pallas_call(
        kernel,
        out_shape=jax.ShapeDtypeStruct((nb, bt, n_pad), jnp.float32),
        grid_spec=pltpu.PrefetchScalarGridSpec(
            num_scalar_prefetch=0,
            grid=(nb, nt),
            in_specs=[
                pl.BlockSpec((bt, C_pad, Lp_ext), lambda i, j: (i, 0, 0)),  # x
                pl.BlockSpec((C_core, K9), lambda i, j: (0, 0)),            # conv W
                pl.BlockSpec((C_core, 1), lambda i, j: (0, 0)),             # conv b
                pl.BlockSpec((K, tn), lambda i, j: (0, j)),                 # readout W tile
                pl.BlockSpec((1, tn), lambda i, j: (0, j)),                 # readout b tile
            ],
            out_specs=pl.BlockSpec((1, bt, tn), lambda i, j: (i, 0, j)),
            scratch_shapes=[
                pltpu.VMEM((bt, K), jnp.float32),        # flattened core features
                pltpu.VMEM((K9, Lw_pad), jnp.bfloat16),  # fused conv-K staging
            ],
        ),
        compiler_params=pltpu.CompilerParams(
            dimension_semantics=("parallel", "arbitrary"),
            vmem_limit_bytes=vmem_limit),
        cost_estimate=pl.CostEstimate(
            flops=flops,
            transcendentals=B * C_core * Lw_pad + B * n_pad,
            bytes_accessed=bytes_accessed),
    )(xf, wconv, bconv, wro, bro)

    # TODO(synk): output_attn_weights / per-data_key multi-readout dispatch of
    #             the original Encoder are not representable in this synthetic
    #             core/readout.
    return out.reshape(B, n_pad)[:, :N]


# ----------------------------------------------------------------------------
# Pure-JAX references for validation
# ----------------------------------------------------------------------------
def encoder_reference(params, x, elu_offset, repeat_channel_dim=None,
                      simulate_bf16=False):
    cast = ((lambda a: a.astype(jnp.bfloat16).astype(jnp.float32))
            if simulate_bf16 else (lambda a: a))
    if repeat_channel_dim is not None:
        x = jnp.tile(x, (1, repeat_channel_dim, 1, 1))
        x = x.at[:, 1:, ...].set(0.0)
    y = jax.lax.conv_general_dilated(
        cast(x), cast(params["conv_w"]), window_strides=(1, 1), padding="SAME",
        dimension_numbers=("NCHW", "OIHW", "NCHW"),
        precision=jax.lax.Precision.HIGHEST)
    y = y + params["conv_b"].reshape(1, -1, 1, 1)
    y = jax.nn.elu(y)
    feat = cast(y).reshape(x.shape[0], -1)
    out = jnp.dot(feat, cast(params["readout_w"]),
                  precision=jax.lax.Precision.HIGHEST) + params["readout_b"]
    return jax.nn.elu(out + elu_offset) + 1.0


# ----------------------------------------------------------------------------
# Main
# ----------------------------------------------------------------------------
if __name__ == "__main__":
    key = jax.random.PRNGKey(0)
    B, C_in, H, W = 2, 4, 16, 16
    C_core, N = 8, 10
    elu_offset = 0.5

    k_x, k_cw, k_cb, k_rw, k_rb = jax.random.split(key, 5)
    x = jax.random.normal(k_x, (B, C_in, H, W), dtype=jnp.float32)

    params = {
        "conv_w": jax.random.normal(k_cw, (C_core, C_in, 3, 3), jnp.float32)
                  * (1.0 / jnp.sqrt(C_in * 9.0)),
        "conv_b": jax.random.normal(k_cb, (C_core,), jnp.float32) * 0.1,
        "readout_w": jax.random.normal(k_rw, (C_core * H * W, N), jnp.float32)
                     * (1.0 / jnp.sqrt(C_core * H * W * 1.0)),
        "readout_b": jax.random.normal(k_rb, (N,), jnp.float32) * 0.1,
    }

    out = jax.block_until_ready(encoder_forward(params, x, elu_offset))
    assert out.shape == (B, N), out.shape

    # Tight check: reference with the same bf16 rounding points (kernel does
    # exact bf16 products with f32 accumulation).
    ref_bf16 = encoder_reference(params, x, elu_offset, simulate_bf16=True)
    assert jnp.allclose(out, ref_bf16, atol=2e-3, rtol=2e-3), \
        float(jnp.max(jnp.abs(out - ref_bf16)))

    # Loose check: pure-f32 PyTorch-equivalent semantics.
    ref_f32 = encoder_reference(params, x, elu_offset)
    assert jnp.allclose(out, ref_f32, atol=5e-2, rtol=5e-2), \
        float(jnp.max(jnp.abs(out - ref_f32)))

    print("KERNEL_OK")
</pallas_src>

<mosaic_0001>
module attributes {stable_mosaic.version = 11 : i64} {
  func.func @_encoder_fused_kernel(%arg0: i32, %arg1: i32, %arg2: memref<2x8x512xbf16, #tpu.memory_space<vmem>>, %arg3: memref<8x72xbf16, #tpu.memory_space<vmem>>, %arg4: memref<8x1xf32, #tpu.memory_space<vmem>>, %arg5: memref<3072x128xbf16, #tpu.memory_space<vmem>>, %arg6: memref<1x128xf32, #tpu.memory_space<vmem>>, %arg7: memref<1x2x128xf32, #tpu.memory_space<vmem>>, %arg8: memref<2x3072xf32, #tpu.memory_space<vmem>>, %arg9: memref<72x384xbf16, #tpu.memory_space<vmem>>) attributes {dimension_semantics = [#tpu.dimension_semantics<parallel>, #tpu.dimension_semantics<arbitrary>], iteration_bounds = array<i64: 1, 1>, scalar_prefetch = 0 : i64, scratch_operands = 2 : i64, tpu.core_type = #tpu.core_type<tc>, window_params = [{transform_indices = @transform_0, window_bounds = array<i64: 2, 8, 512>}, {pipeline_mode = #tpu.pipeline_mode<synchronous>, transform_indices = @transform_1, window_bounds = array<i64: 8, 72>}, {pipeline_mode = #tpu.pipeline_mode<synchronous>, transform_indices = @transform_2, window_bounds = array<i64: 8, 1>}, {transform_indices = @transform_3, window_bounds = array<i64: 3072, 128>}, {transform_indices = @transform_4, window_bounds = array<i64: 1, 128>}, {transform_indices = @transform_5, window_bounds = array<i64: 1, 2, 128>}]} {
    %c0_i32 = arith.constant 0 : i32
    %0 = arith.cmpi eq, %arg1, %c0_i32 : i32
    %1 = arith.extui %0 : i1 to i32
    %c0_i32_0 = arith.constant 0 : i32
    %2 = arith.cmpi ne, %1, %c0_i32_0 : i32
    scf.if %2 {
      %c0_14 = arith.constant 0 : index
      %c0_15 = arith.constant 0 : index
      %c0_16 = arith.constant 0 : index
      %25 = vector.load %arg2[%c0_14, %c0_15, %c0_16] : memref<2x8x512xbf16, #tpu.memory_space<vmem>>, vector<1x8x384xbf16>
      %26 = vector.shape_cast %25 : vector<1x8x384xbf16> to vector<8x384xbf16>
      %c0_17 = arith.constant 0 : index
      %c0_18 = arith.constant 0 : index
      %27 = vector.load %arg9[%c0_17, %c0_18] : memref<72x384xbf16, #tpu.memory_space<vmem>>, vector<8x384xbf16>
      tpu.vector_store %arg9[%c0_17, %c0_18], %26 {strides = array<i32>} : memref<72x384xbf16, #tpu.memory_space<vmem>>, vector<8x384xbf16>,
      %c0_19 = arith.constant 0 : index
      %c0_20 = arith.constant 0 : index
      %c1 = arith.constant 1 : index
      %28 = vector.load %arg2[%c0_19, %c0_20, %c1] : memref<2x8x512xbf16, #tpu.memory_space<vmem>>, vector<1x8x384xbf16>
      %29 = vector.shape_cast %28 : vector<1x8x384xbf16> to vector<8x384xbf16>
      %c8 = arith.constant 8 : index
      %c0_21 = arith.constant 0 : index
      %30 = vector.load %arg9[%c8, %c0_21] : memref<72x384xbf16, #tpu.memory_space<vmem>>, vector<8x384xbf16>
      tpu.vector_store %arg9[%c8, %c0_21], %29 {strides = array<i32>} : memref<72x384xbf16, #tpu.memory_space<vmem>>, vector<8x384xbf16>,
      %c0_22 = arith.constant 0 : index
      %c0_23 = arith.constant 0 : index
      %c2 = arith.constant 2 : index
      %31 = vector.load %arg2[%c0_22, %c0_23, %c2] : memref<2x8x512xbf16, #tpu.memory_space<vmem>>, vector<1x8x384xbf16>
      %32 = vector.shape_cast %31 : vector<1x8x384xbf16> to vector<8x384xbf16>
      %c16 = arith.constant 16 : index
      %c0_24 = arith.constant 0 : index
      %33 = vector.load %arg9[%c16, %c0_24] : memref<72x384xbf16, #tpu.memory_space<vmem>>, vector<8x384xbf16>
      tpu.vector_store %arg9[%c16, %c0_24], %32 {strides = array<i32>} : memref<72x384xbf16, #tpu.memory_space<vmem>>, vector<8x384xbf16>,
      %c0_25 = arith.constant 0 : index
      %c0_26 = arith.constant 0 : index
      %c18 = arith.constant 18 : index
      %34 = vector.load %arg2[%c0_25, %c0_26, %c18] : memref<2x8x512xbf16, #tpu.memory_space<vmem>>, vector<1x8x384xbf16>
      %35 = vector.shape_cast %34 : vector<1x8x384xbf16> to vector<8x384xbf16>
      %c24 = arith.constant 24 : index
      %c0_27 = arith.constant 0 : index
      %36 = vector.load %arg9[%c24, %c0_27] : memref<72x384xbf16, #tpu.memory_space<vmem>>, vector<8x384xbf16>
      tpu.vector_store %arg9[%c24, %c0_27], %35 {strides = array<i32>} : memref<72x384xbf16, #tpu.memory_space<vmem>>, vector<8x384xbf16>,
      %c0_28 = arith.constant 0 : index
      %c0_29 = arith.constant 0 : index
      %c19 = arith.constant 19 : index
      %37 = vector.load %arg2[%c0_28, %c0_29, %c19] : memref<2x8x512xbf16, #tpu.memory_space<vmem>>, vector<1x8x384xbf16>
      %38 = vector.shape_cast %37 : vector<1x8x384xbf16> to vector<8x384xbf16>
      %c32 = arith.constant 32 : index
      %c0_30 = arith.constant 0 : index
      %39 = vector.load %arg9[%c32, %c0_30] : memref<72x384xbf16, #tpu.memory_space<vmem>>, vector<8x384xbf16>
      tpu.vector_store %arg9[%c32, %c0_30], %38 {strides = array<i32>} : memref<72x384xbf16, #tpu.memory_space<vmem>>, vector<8x384xbf16>,
      %c0_31 = arith.constant 0 : index
      %c0_32 = arith.constant 0 : index
      %c20 = arith.constant 20 : index
      %40 = vector.load %arg2[%c0_31, %c0_32, %c20] : memref<2x8x512xbf16, #tpu.memory_space<vmem>>, vector<1x8x384xbf16>
      %41 = vector.shape_cast %40 : vector<1x8x384xbf16> to vector<8x384xbf16>
      %c40 = arith.constant 40 : index
      %c0_33 = arith.constant 0 : index
      %42 = vector.load %arg9[%c40, %c0_33] : memref<72x384xbf16, #tpu.memory_space<vmem>>, vector<8x384xbf16>
      tpu.vector_store %arg9[%c40, %c0_33], %41 {strides = array<i32>} : memref<72x384xbf16, #tpu.memory_space<vmem>>, vector<8x384xbf16>,
      %c0_34 = arith.constant 0 : index
      %c0_35 = arith.constant 0 : index
      %c36 = arith.constant 36 : index
      %43 = vector.load %arg2[%c0_34, %c0_35, %c36] : memref<2x8x512xbf16, #tpu.memory_space<vmem>>, vector<1x8x384xbf16>
      %44 = vector.shape_cast %43 : vector<1x8x384xbf16> to vector<8x384xbf16>
      %c48 = arith.constant 48 : index
      %c0_36 = arith.constant 0 : index
      %45 = vector.load %arg9[%c48, %c0_36] : memref<72x384xbf16, #tpu.memory_space<vmem>>, vector<8x384xbf16>
      tpu.vector_store %arg9[%c48, %c0_36], %44 {strides = array<i32>} : memref<72x384xbf16, #tpu.memory_space<vmem>>, vector<8x384xbf16>,
      %c0_37 = arith.constant 0 : index
      %c0_38 = arith.constant 0 : index
      %c37 = arith.constant 37 : index
      %46 = vector.load %arg2[%c0_37, %c0_38, %c37] : memref<2x8x512xbf16, #tpu.memory_space<vmem>>, vector<1x8x384xbf16>
      %47 = vector.shape_cast %46 : vector<1x8x384xbf16> to vector<8x384xbf16>
      %c56 = arith.constant 56 : index
      %c0_39 = arith.constant 0 : index
      %48 = vector.load %arg9[%c56, %c0_39] : memref<72x384xbf16, #tpu.memory_space<vmem>>, vector<8x384xbf16>
      tpu.vector_store %arg9[%c56, %c0_39], %47 {strides = array<i32>} : memref<72x384xbf16, #tpu.memory_space<vmem>>, vector<8x384xbf16>,
      %c0_40 = arith.constant 0 : index
      %c0_41 = arith.constant 0 : index
      %c38 = arith.constant 38 : index
      %49 = vector.load %arg2[%c0_40, %c0_41, %c38] : memref<2x8x512xbf16, #tpu.memory_space<vmem>>, vector<1x8x384xbf16>
      %50 = vector.shape_cast %49 : vector<1x8x384xbf16> to vector<8x384xbf16>
      %c64 = arith.constant 64 : index
      %c0_42 = arith.constant 0 : index
      %51 = vector.load %arg9[%c64, %c0_42] : memref<72x384xbf16, #tpu.memory_space<vmem>>, vector<8x384xbf16>
      tpu.vector_store %arg9[%c64, %c0_42], %50 {strides = array<i32>} : memref<72x384xbf16, #tpu.memory_space<vmem>>, vector<8x384xbf16>,
      %c0_43 = arith.constant 0 : index
      %c0_44 = arith.constant 0 : index
      %52 = vector.load %arg3[%c0_43, %c0_44] : memref<8x72xbf16, #tpu.memory_space<vmem>>, vector<8x72xbf16>
      %c0_45 = arith.constant 0 : index
      %c0_46 = arith.constant 0 : index
      %53 = vector.load %arg9[%c0_45, %c0_46] : memref<72x384xbf16, #tpu.memory_space<vmem>>, vector<72x384xbf16>
      %cst_47 = arith.constant dense<0.000000e+00> : vector<8x384xf32>
      %54 = tpu.matmul %52, %53, %cst_47 {dimension_numbers = #tpu.dot_dimension_numbers<[1], [0], [0], [1], [0, 0, 1, 1], [], []>} : vector<8x72xbf16>, vector<72x384xbf16>, vector<8x384xf32> -> vector<8x384xf32>
      %c0_48 = arith.constant 0 : index
      %c0_49 = arith.constant 0 : index
      %55 = vector.load %arg4[%c0_48, %c0_49] : memref<8x1xf32, #tpu.memory_space<vmem>>, vector<8x1xf32>
      %56 = vector.broadcast %55 : vector<8x1xf32> to vector<8x384xf32>
      %57 = arith.addf %54, %56 : vector<8x384xf32>
      %cst_50 = arith.constant 0.000000e+00 : f32
      %58 = vector.broadcast %cst_50 : f32 to vector<8x384xf32>
      %59 = arith.cmpf ogt, %57, %58 : vector<8x384xf32>
      %cst_51 = arith.constant 0.000000e+00 : f32
      %60 = vector.broadcast %cst_51 : f32 to vector<8x384xf32>
      %61 = arith.minimumf %57, %60 : vector<8x384xf32>
      %62 = math.exp %61 : vector<8x384xf32>
      %cst_52 = arith.constant 1.000000e+00 : f32
      %63 = vector.broadcast %cst_52 : f32 to vector<8x384xf32>
      %64 = arith.subf %62, %63 : vector<8x384xf32>
      %65 = arith.select %59, %57, %64 : vector<8x384xi1>, vector<8x384xf32>
      %66 = vector.extract_strided_slice %65 {offsets = [0, 0], sizes = [1, 384], strides = [1, 1]} : vector<8x384xf32> to vector<1x384xf32>
      %c0_53 = arith.constant 0 : index
      %c0_54 = arith.constant 0 : index
      %67 = vector.load %arg8[%c0_53, %c0_54] : memref<2x3072xf32, #tpu.memory_space<vmem>>, vector<1x384xf32>
      tpu.vector_store %arg8[%c0_53, %c0_54], %66 {strides = array<i32>} : memref<2x3072xf32, #tpu.memory_space<vmem>>, vector<1x384xf32>,
      %68 = vector.extract_strided_slice %65 {offsets = [1, 0], sizes = [1, 384], strides = [1, 1]} : vector<8x384xf32> to vector<1x384xf32>
      %c0_55 = arith.constant 0 : index
      %c384 = arith.constant 384 : index
      %69 = vector.load %arg8[%c0_55, %c384] : memref<2x3072xf32, #tpu.memory_space<vmem>>, vector<1x384xf32>
      tpu.vector_store %arg8[%c0_55, %c384], %68 {strides = array<i32>} : memref<2x3072xf32, #tpu.memory_space<vmem>>, vector<1x384xf32>,
      %70 = vector.extract_strided_slice %65 {offsets = [2, 0], sizes = [1, 384], strides = [1, 1]} : vector<8x384xf32> to vector<1x384xf32>
      %c0_56 = arith.constant 0 : index
      %c768 = arith.constant 768 : index
      %71 = vector.load %arg8[%c0_56, %c768] : memref<2x3072xf32, #tpu.memory_space<vmem>>, vector<1x384xf32>
      tpu.vector_store %arg8[%c0_56, %c768], %70 {strides = array<i32>} : memref<2x3072xf32, #tpu.memory_space<vmem>>, vector<1x384xf32>,
      %72 = vector.extract_strided_slice %65 {offsets = [3, 0], sizes = [1, 384], strides = [1, 1]} : vector<8x384xf32> to vector<1x384xf32>
      %c0_57 = arith.constant 0 : index
      %c1152 = arith.constant 1152 : index
      %73 = vector.load %arg8[%c0_57, %c1152] : memref<2x3072xf32, #tpu.memory_space<vmem>>, vector<1x384xf32>
      tpu.vector_store %arg8[%c0_57, %c1152], %72 {strides = array<i32>} : memref<2x3072xf32, #tpu.memory_space<vmem>>, vector<1x384xf32>,
      %74 = vector.extract_strided_slice %65 {offsets = [4, 0], sizes = [1, 384], strides = [1, 1]} : vector<8x384xf32> to vector<1x384xf32>
      %c0_58 = arith.constant 0 : index
      %c1536 = arith.constant 1536 : index
      %75 = vector.load %arg8[%c0_58, %c1536] : memref<2x3072xf32, #tpu.memory_space<vmem>>, vector<1x384xf32>
      tpu.vector_store %arg8[%c0_58, %c1536], %74 {strides = array<i32>} : memref<2x3072xf32, #tpu.memory_space<vmem>>, vector<1x384xf32>,
      %76 = vector.extract_strided_slice %65 {offsets = [5, 0], sizes = [1, 384], strides = [1, 1]} : vector<8x384xf32> to vector<1x384xf32>
      %c0_59 = arith.constant 0 : index
      %c1920 = arith.constant 1920 : index
      %77 = vector.load %arg8[%c0_59, %c1920] : memref<2x3072xf32, #tpu.memory_space<vmem>>, vector<1x384xf32>
      tpu.vector_store %arg8[%c0_59, %c1920], %76 {strides = array<i32>} : memref<2x3072xf32, #tpu.memory_space<vmem>>, vector<1x384xf32>,
      %78 = vector.extract_strided_slice %65 {offsets = [6, 0], sizes = [1, 384], strides = [1, 1]} : vector<8x384xf32> to vector<1x384xf32>
      %c0_60 = arith.constant 0 : index
      %c2304 = arith.constant 2304 : index
      %79 = vector.load %arg8[%c0_60, %c2304] : memref<2x3072xf32, #tpu.memory_space<vmem>>, vector<1x384xf32>
      tpu.vector_store %arg8[%c0_60, %c2304], %78 {strides = array<i32>} : memref<2x3072xf32, #tpu.memory_space<vmem>>, vector<1x384xf32>,
      %80 = vector.extract_strided_slice %65 {offsets = [7, 0], sizes = [1, 384], strides = [1, 1]} : vector<8x384xf32> to vector<1x384xf32>
      %c0_61 = arith.constant 0 : index
      %c2688 = arith.constant 2688 : index
      %81 = vector.load %arg8[%c0_61, %c2688] : memref<2x3072xf32, #tpu.memory_space<vmem>>, vector<1x384xf32>
      tpu.vector_store %arg8[%c0_61, %c2688], %80 {strides = array<i32>} : memref<2x3072xf32, #tpu.memory_space<vmem>>, vector<1x384xf32>,
      %c1_62 = arith.constant 1 : index
      %c0_63 = arith.constant 0 : index
      %c0_64 = arith.constant 0 : index
      %82 = vector.load %arg2[%c1_62, %c0_63, %c0_64] : memref<2x8x512xbf16, #tpu.memory_space<vmem>>, vector<1x8x384xbf16>
      %83 = vector.shape_cast %82 : vector<1x8x384xbf16> to vector<8x384xbf16>
      %c0_65 = arith.constant 0 : index
      %c0_66 = arith.constant 0 : index
      %84 = vector.load %arg9[%c0_65, %c0_66] : memref<72x384xbf16, #tpu.memory_space<vmem>>, vector<8x384xbf16>
      tpu.vector_store %arg9[%c0_65, %c0_66], %83 {strides = array<i32>} : memref<72x384xbf16, #tpu.memory_space<vmem>>, vector<8x384xbf16>,
      %c1_67 = arith.constant 1 : index
      %c0_68 = arith.constant 0 : index
      %c1_69 = arith.constant 1 : index
      %85 = vector.load %arg2[%c1_67, %c0_68, %c1_69] : memref<2x8x512xbf16, #tpu.memory_space<vmem>>, vector<1x8x384xbf16>
      %86 = vector.shape_cast %85 : vector<1x8x384xbf16> to vector<8x384xbf16>
      %c8_70 = arith.constant 8 : index
      %c0_71 = arith.constant 0 : index
      %87 = vector.load %arg9[%c8_70, %c0_71] : memref<72x384xbf16, #tpu.memory_space<vmem>>, vector<8x384xbf16>
      tpu.vector_store %arg9[%c8_70, %c0_71], %86 {strides = array<i32>} : memref<72x384xbf16, #tpu.memory_space<vmem>>, vector<8x384xbf16>,
      %c1_72 = arith.constant 1 : index
      %c0_73 = arith.constant 0 : index
      %c2_74 = arith.constant 2 : index
      %88 = vector.load %arg2[%c1_72, %c0_73, %c2_74] : memref<2x8x512xbf16, #tpu.memory_space<vmem>>, vector<1x8x384xbf16>
      %89 = vector.shape_cast %88 : vector<1x8x384xbf16> to vector<8x384xbf16>
      %c16_75 = arith.constant 16 : index
      %c0_76 = arith.constant 0 : index
      %90 = vector.load %arg9[%c16_75, %c0_76] : memref<72x384xbf16, #tpu.memory_space<vmem>>, vector<8x384xbf16>
      tpu.vector_store %arg9[%c16_75, %c0_76], %89 {strides = array<i32>} : memref<72x384xbf16, #tpu.memory_space<vmem>>, vector<8x384xbf16>,
      %c1_77 = arith.constant 1 : index
      %c0_78 = arith.constant 0 : index
      %c18_79 = arith.constant 18 : index
      %91 = vector.load %arg2[%c1_77, %c0_78, %c18_79] : memref<2x8x512xbf16, #tpu.memory_space<vmem>>, vector<1x8x384xbf16>
      %92 = vector.shape_cast %91 : vector<1x8x384xbf16> to vector<8x384xbf16>
      %c24_80 = arith.constant 24 : index
      %c0_81 = arith.constant 0 : index
      %93 = vector.load %arg9[%c24_80, %c0_81] : memref<72x384xbf16, #tpu.memory_space<vmem>>, vector<8x384xbf16>
      tpu.vector_store %arg9[%c24_80, %c0_81], %92 {strides = array<i32>} : memref<72x384xbf16, #tpu.memory_space<vmem>>, vector<8x384xbf16>,
      %c1_82 = arith.constant 1 : index
      %c0_83 = arith.constant 0 : index
      %c19_84 = arith.constant 19 : index
      %94 = vector.load %arg2[%c1_82, %c0_83, %c19_84] : memref<2x8x512xbf16, #tpu.memory_space<vmem>>, vector<1x8x384xbf16>
      %95 = vector.shape_cast %94 : vector<1x8x384xbf16> to vector<8x384xbf16>
      %c32_85 = arith.constant 32 : index
      %c0_86 = arith.constant 0 : index
      %96 = vector.load %arg9[%c32_85, %c0_86] : memref<72x384xbf16, #tpu.memory_space<vmem>>, vector<8x384xbf16>
      tpu.vector_store %arg9[%c32_85, %c0_86], %95 {strides = array<i32>} : memref<72x384xbf16, #tpu.memory_space<vmem>>, vector<8x384xbf16>,
      %c1_87 = arith.constant 1 : index
      %c0_88 = arith.constant 0 : index
      %c20_89 = arith.constant 20 : index
      %97 = vector.load %arg2[%c1_87, %c0_88, %c20_89] : memref<2x8x512xbf16, #tpu.memory_space<vmem>>, vector<1x8x384xbf16>
      %98 = vector.shape_cast %97 : vector<1x8x384xbf16> to vector<8x384xbf16>
      %c40_90 = arith.constant 40 : index
      %c0_91 = arith.constant 0 : index
      %99 = vector.load %arg9[%c40_90, %c0_91] : memref<72x384xbf16, #tpu.memory_space<vmem>>, vector<8x384xbf16>
      tpu.vector_store %arg9[%c40_90, %c0_91], %98 {strides = array<i32>} : memref<72x384xbf16, #tpu.memory_space<vmem>>, vector<8x384xbf16>,
      %c1_92 = arith.constant 1 : index
      %c0_93 = arith.constant 0 : index
      %c36_94 = arith.constant 36 : index
      %100 = vector.load %arg2[%c1_92, %c0_93, %c36_94] : memref<2x8x512xbf16, #tpu.memory_space<vmem>>, vector<1x8x384xbf16>
      %101 = vector.shape_cast %100 : vector<1x8x384xbf16> to vector<8x384xbf16>
      %c48_95 = arith.constant 48 : index
      %c0_96 = arith.constant 0 : index
      %102 = vector.load %arg9[%c48_95, %c0_96] : memref<72x384xbf16, #tpu.memory_space<vmem>>, vector<8x384xbf16>
      tpu.vector_store %arg9[%c48_95, %c0_96], %101 {strides = array<i32>} : memref<72x384xbf16, #tpu.memory_space<vmem>>, vector<8x384xbf16>,
      %c1_97 = arith.constant 1 : index
      %c0_98 = arith.constant 0 : index
      %c37_99 = arith.constant 37 : index
      %103 = vector.load %arg2[%c1_97, %c0_98, %c37_99] : memref<2x8x512xbf16, #tpu.memory_space<vmem>>, vector<1x8x384xbf16>
      %104 = vector.shape_cast %103 : vector<1x8x384xbf16> to vector<8x384xbf16>
      %c56_100 = arith.constant 56 : index
      %c0_101 = arith.constant 0 : index
      %105 = vector.load %arg9[%c56_100, %c0_101] : memref<72x384xbf16, #tpu.memory_space<vmem>>, vector<8x384xbf16>
      tpu.vector_store %arg9[%c56_100, %c0_101], %104 {strides = array<i32>} : memref<72x384xbf16, #tpu.memory_space<vmem>>, vector<8x384xbf16>,
      %c1_102 = arith.constant 1 : index
      %c0_103 = arith.constant 0 : index
      %c38_104 = arith.constant 38 : index
      %106 = vector.load %arg2[%c1_102, %c0_103, %c38_104] : memref<2x8x512xbf16, #tpu.memory_space<vmem>>, vector<1x8x384xbf16>
      %107 = vector.shape_cast %106 : vector<1x8x384xbf16> to vector<8x384xbf16>
      %c64_105 = arith.constant 64 : index
      %c0_106 = arith.constant 0 : index
      %108 = vector.load %arg9[%c64_105, %c0_106] : memref<72x384xbf16, #tpu.memory_space<vmem>>, vector<8x384xbf16>
      tpu.vector_store %arg9[%c64_105, %c0_106], %107 {strides = array<i32>} : memref<72x384xbf16, #tpu.memory_space<vmem>>, vector<8x384xbf16>,
      %c0_107 = arith.constant 0 : index
      %c0_108 = arith.constant 0 : index
      %109 = vector.load %arg3[%c0_107, %c0_108] : memref<8x72xbf16, #tpu.memory_space<vmem>>, vector<8x72xbf16>
      %c0_109 = arith.constant 0 : index
      %c0_110 = arith.constant 0 : index
      %110 = vector.load %arg9[%c0_109, %c0_110] : memref<72x384xbf16, #tpu.memory_space<vmem>>, vector<72x384xbf16>
      %cst_111 = arith.constant dense<0.000000e+00> : vector<8x384xf32>
      %111 = tpu.matmul %109, %110, %cst_111 {dimension_numbers = #tpu.dot_dimension_numbers<[1], [0], [0], [1], [0, 0, 1, 1], [], []>} : vector<8x72xbf16>, vector<72x384xbf16>, vector<8x384xf32> -> vector<8x384xf32>
      %c0_112 = arith.constant 0 : index
      %c0_113 = arith.constant 0 : index
      %112 = vector.load %arg4[%c0_112, %c0_113] : memref<8x1xf32, #tpu.memory_space<vmem>>, vector<8x1xf32>
      %113 = vector.broadcast %112 : vector<8x1xf32> to vector<8x384xf32>
      %114 = arith.addf %111, %113 : vector<8x384xf32>
      %cst_114 = arith.constant 0.000000e+00 : f32
      %115 = vector.broadcast %cst_114 : f32 to vector<8x384xf32>
      %116 = arith.cmpf ogt, %114, %115 : vector<8x384xf32>
      %cst_115 = arith.constant 0.000000e+00 : f32
      %117 = vector.broadcast %cst_115 : f32 to vector<8x384xf32>
      %118 = arith.minimumf %114, %117 : vector<8x384xf32>
      %119 = math.exp %118 : vector<8x384xf32>
      %cst_116 = arith.constant 1.000000e+00 : f32
      %120 = vector.broadcast %cst_116 : f32 to vector<8x384xf32>
      %121 = arith.subf %119, %120 : vector<8x384xf32>
      %122 = arith.select %116, %114, %121 : vector<8x384xi1>, vector<8x384xf32>
      %123 = vector.extract_strided_slice %122 {offsets = [0, 0], sizes = [1, 384], strides = [1, 1]} : vector<8x384xf32> to vector<1x384xf32>
      %c1_117 = arith.constant 1 : index
      %c0_118 = arith.constant 0 : index
      %124 = vector.load %arg8[%c1_117, %c0_118] : memref<2x3072xf32, #tpu.memory_space<vmem>>, vector<1x384xf32>
      tpu.vector_store %arg8[%c1_117, %c0_118], %123 {strides = array<i32>} : memref<2x3072xf32, #tpu.memory_space<vmem>>, vector<1x384xf32>,
      %125 = vector.extract_strided_slice %122 {offsets = [1, 0], sizes = [1, 384], strides = [1, 1]} : vector<8x384xf32> to vector<1x384xf32>
      %c1_119 = arith.constant 1 : index
      %c384_120 = arith.constant 384 : index
      %126 = vector.load %arg8[%c1_119, %c384_120] : memref<2x3072xf32, #tpu.memory_space<vmem>>, vector<1x384xf32>
      tpu.vector_store %arg8[%c1_119, %c384_120], %125 {strides = array<i32>} : memref<2x3072xf32, #tpu.memory_space<vmem>>, vector<1x384xf32>,
      %127 = vector.extract_strided_slice %122 {offsets = [2, 0], sizes = [1, 384], strides = [1, 1]} : vector<8x384xf32> to vector<1x384xf32>
      %c1_121 = arith.constant 1 : index
      %c768_122 = arith.constant 768 : index
      %128 = vector.load %arg8[%c1_121, %c768_122] : memref<2x3072xf32, #tpu.memory_space<vmem>>, vector<1x384xf32>
      tpu.vector_store %arg8[%c1_121, %c768_122], %127 {strides = array<i32>} : memref<2x3072xf32, #tpu.memory_space<vmem>>, vector<1x384xf32>,
      %129 = vector.extract_strided_slice %122 {offsets = [3, 0], sizes = [1, 384], strides = [1, 1]} : vector<8x384xf32> to vector<1x384xf32>
      %c1_123 = arith.constant 1 : index
      %c1152_124 = arith.constant 1152 : index
      %130 = vector.load %arg8[%c1_123, %c1152_124] : memref<2x3072xf32, #tpu.memory_space<vmem>>, vector<1x384xf32>
      tpu.vector_store %arg8[%c1_123, %c1152_124], %129 {strides = array<i32>} : memref<2x3072xf32, #tpu.memory_space<vmem>>, vector<1x384xf32>,
      %131 = vector.extract_strided_slice %122 {offsets = [4, 0], sizes = [1, 384], strides = [1, 1]} : vector<8x384xf32> to vector<1x384xf32>
      %c1_125 = arith.constant 1 : index
      %c1536_126 = arith.constant 1536 : index
      %132 = vector.load %arg8[%c1_125, %c1536_126] : memref<2x3072xf32, #tpu.memory_space<vmem>>, vector<1x384xf32>
      tpu.vector_store %arg8[%c1_125, %c1536_126], %131 {strides = array<i32>} : memref<2x3072xf32, #tpu.memory_space<vmem>>, vector<1x384xf32>,
      %133 = vector.extract_strided_slice %122 {offsets = [5, 0], sizes = [1, 384], strides = [1, 1]} : vector<8x384xf32> to vector<1x384xf32>
      %c1_127 = arith.constant 1 : index
      %c1920_128 = arith.constant 1920 : index
      %134 = vector.load %arg8[%c1_127, %c1920_128] : memref<2x3072xf32, #tpu.memory_space<vmem>>, vector<1x384xf32>
      tpu.vector_store %arg8[%c1_127, %c1920_128], %133 {strides = array<i32>} : memref<2x3072xf32, #tpu.memory_space<vmem>>, vector<1x384xf32>,
      %135 = vector.extract_strided_slice %122 {offsets = [6, 0], sizes = [1, 384], strides = [1, 1]} : vector<8x384xf32> to vector<1x384xf32>
      %c1_129 = arith.constant 1 : index
      %c2304_130 = arith.constant 2304 : index
      %136 = vector.load %arg8[%c1_129, %c2304_130] : memref<2x3072xf32, #tpu.memory_space<vmem>>, vector<1x384xf32>
      tpu.vector_store %arg8[%c1_129, %c2304_130], %135 {strides = array<i32>} : memref<2x3072xf32, #tpu.memory_space<vmem>>, vector<1x384xf32>,
      %137 = vector.extract_strided_slice %122 {offsets = [7, 0], sizes = [1, 384], strides = [1, 1]} : vector<8x384xf32> to vector<1x384xf32>
      %c1_131 = arith.constant 1 : index
      %c2688_132 = arith.constant 2688 : index
      %138 = vector.load %arg8[%c1_131, %c2688_132] : memref<2x3072xf32, #tpu.memory_space<vmem>>, vector<1x384xf32>
      tpu.vector_store %arg8[%c1_131, %c2688_132], %137 {strides = array<i32>} : memref<2x3072xf32, #tpu.memory_space<vmem>>, vector<1x384xf32>,
    } else {
    }
    %c0 = arith.constant 0 : index
    %c0_1 = arith.constant 0 : index
    %3 = vector.load %arg8[%c0, %c0_1] : memref<2x3072xf32, #tpu.memory_space<vmem>>, vector<2x3072xf32>
    %4 = arith.truncf %3 : vector<2x3072xf32> to vector<2x3072xbf16>
    %c0_2 = arith.constant 0 : index
    %c0_3 = arith.constant 0 : index
    %5 = vector.load %arg5[%c0_2, %c0_3] : memref<3072x128xbf16, #tpu.memory_space<vmem>>, vector<3072x128xbf16>
    %cst = arith.constant dense<0.000000e+00> : vector<2x128xf32>
    %6 = tpu.matmul %4, %5, %cst {dimension_numbers = #tpu.dot_dimension_numbers<[1], [0], [0], [1], [0, 0, 1, 1], [], []>} : vector<2x3072xbf16>, vector<3072x128xbf16>, vector<2x128xf32> -> vector<2x128xf32>
    %c0_4 = arith.constant 0 : index
    %c0_5 = arith.constant 0 : index
    %7 = vector.load %arg6[%c0_4, %c0_5] : memref<1x128xf32, #tpu.memory_space<vmem>>, vector<1x128xf32>
    %8 = vector.broadcast %7 : vector<1x128xf32> to vector<2x128xf32>
    %9 = arith.addf %6, %8 : vector<2x128xf32>
    %cst_6 = arith.constant 5.000000e-01 : f32
    %10 = vector.broadcast %cst_6 : f32 to vector<2x128xf32>
    %11 = arith.addf %9, %10 : vector<2x128xf32>
    %cst_7 = arith.constant 0.000000e+00 : f32
    %12 = vector.broadcast %cst_7 : f32 to vector<2x128xf32>
    %13 = arith.cmpf ogt, %11, %12 : vector<2x128xf32>
    %cst_8 = arith.constant 0.000000e+00 : f32
    %14 = vector.broadcast %cst_8 : f32 to vector<2x128xf32>
    %15 = arith.minimumf %11, %14 : vector<2x128xf32>
    %16 = math.exp %15 : vector<2x128xf32>
    %cst_9 = arith.constant 1.000000e+00 : f32
    %17 = vector.broadcast %cst_9 : f32 to vector<2x128xf32>
    %18 = arith.subf %16, %17 : vector<2x128xf32>
    %19 = arith.select %13, %11, %18 : vector<2x128xi1>, vector<2x128xf32>
    %cst_10 = arith.constant 1.000000e+00 : f32
    %20 = vector.broadcast %cst_10 : f32 to vector<2x128xf32>
    %21 = arith.addf %19, %20 : vector<2x128xf32>
    %c0_11 = arith.constant 0 : index
    %c0_12 = arith.constant 0 : index
    %c0_13 = arith.constant 0 : index
    %22 = vector.load %arg7[%c0_11, %c0_12, %c0_13] : memref<1x2x128xf32, #tpu.memory_space<vmem>>, vector<1x2x128xf32>
    %23 = vector.shape_cast %22 : vector<1x2x128xf32> to vector<2x128xf32>
    %24 = vector.shape_cast %21 : vector<2x128xf32> to vector<1x2x128xf32>
    tpu.vector_store %arg7[%c0_11, %c0_12, %c0_13], %24 {strides = array<i32>} : memref<1x2x128xf32, #tpu.memory_space<vmem>>, vector<1x2x128xf32>,
    return
  }
  func.func @transform_0(%arg0: i32, %arg1: i32) -> (i32, i32, i32) {
    %c0_i32 = arith.constant 0 : i32
    %c0_i32_0 = arith.constant 0 : i32
    %c0_i32_1 = arith.constant 0 : i32
    return %arg0, %c0_i32, %c0_i32_0 : i32, i32, i32
  }
  func.func @transform_1(%arg0: i32, %arg1: i32) -> (i32, i32) {
    %c0_i32 = arith.constant 0 : i32
    %c0_i32_0 = arith.constant 0 : i32
    %c0_i32_1 = arith.constant 0 : i32
    return %c0_i32, %c0_i32_0 : i32, i32
  }
  func.func @transform_2(%arg0: i32, %arg1: i32) -> (i32, i32) {
    %c0_i32 = arith.constant 0 : i32
    %c0_i32_0 = arith.constant 0 : i32
    %c0_i32_1 = arith.constant 0 : i32
    return %c0_i32, %c0_i32_0 : i32, i32
  }
  func.func @transform_3(%arg0: i32, %arg1: i32) -> (i32, i32) {
    %c0_i32 = arith.constant 0 : i32
    %c0_i32_0 = arith.constant 0 : i32
    return %c0_i32, %arg1 : i32, i32
  }
  func.func @transform_4(%arg0: i32, %arg1: i32) -> (i32, i32) {
    %c0_i32 = arith.constant 0 : i32
    %c0_i32_0 = arith.constant 0 : i32
    return %c0_i32, %arg1 : i32, i32
  }
  func.func @transform_5(%arg0: i32, %arg1: i32) -> (i32, i32, i32) {
    %c0_i32 = arith.constant 0 : i32
    %c0_i32_0 = arith.constant 0 : i32
    return %arg0, %c0_i32, %arg1 : i32, i32, i32
  }
}

</mosaic_0001>

<bundles_post_ra>
// kernel: tpu_custom_call.1
= control target key start
LH: loop header
LB: loop body
LE: loop exit
PB: predicated region body
PF: predicated region fallthrough
CT: control target
= control target key end

     0   :  { %10 = vsyncpa [#allocation5], 0  ;;  %s4310_s0 = inlined_call_operand.hbm [shape: bf16[2,8,512], index: 0, kind: input, shape index: {}]   ;;  %s4311_s1 = inlined_call_operand.vmem [shape: bf16[8,72], index: 1, kind: input, shape index: {}]   ;;  %s4312_s2 = inlined_call_operand.vmem [shape: f32[8,1], index: 2, kind: input, shape index: {}]   ;;  %s4313_s3 = inlined_call_operand.hbm [shape: bf16[3072,128], index: 3, kind: input, shape index: {}]   ;;  %s4314_s4 = inlined_call_operand.vmem [shape: f32[1,128], index: 4, kind: input, shape index: {}]   ;;  %s4315_s5 = inlined_call_operand.hbm [shape: f32[1,2,128], index: 5, kind: output, shape index: {}]  }
   0x1   :  { %11 = vsyncpa [#allocation8], 0 }
   0x2   :  { %12 = vsyncpa [#allocation6], 0  ;;  %s4015_s18 = smov [#allocation4]  }
   0x3   :  { %s18_s19 = sshll.u32 %s4015_s18, 4  ;;  %s19_s19 = int_to_ptr.vmem [resolvable:$true] %s18_s19 }
   0x4   :  { %s3957_s20 = scalar_lea.vmem %s19_s19, 512  ;;  %p3962_p1 = scmp.lt.s32.totalorder %s19_s19, %s19_s19 }
   0x5   :  { %p3958_p0 = scmp.ne.s32.totalorder %s19_s19, %s3957_s20  ;;  %p3963_p2 = scmp.lt.s32.totalorder %s3957_s20, %s3957_s20 }
   0x7   :  { %p3964_p3 = por %p3963_p2, %p3962_p1 }
   0x9   :  { %p3965_p4 = pnand %p3964_p3, %p3958_p0 }
   0xb   :  { %3968 = shalt.err (!%p3965_p4)
}
   0xc   :  { %s4016_s21 = smov 256   ;;  %s4017_s22 = smov 16  }
   0xd   :  { %24 = dma.hbm_to_vmem [thread:$0]  %s4310_s0, 512, %s19_s19, [#allocation5], %s4016_s21, %s4016_s21, %s4017_s22  }
   0xe   :  { %s4018_s25 = smov [#allocation7]  }
   0xf   :  { %s34_s26 = sshll.u32 %s4018_s25, 4  ;;  %s35_s26 = int_to_ptr.vmem [resolvable:$true] %s34_s26 }
  0x10   :  { %s3977_s27 = scalar_lea.vmem %s35_s26, 24576  ;;  %p3982_p6 = scmp.lt.s32.totalorder %s35_s26, %s35_s26 }
  0x11   :  { %p3978_p5 = scmp.ne.s32.totalorder %s35_s26, %s3977_s27  ;;  %p3983_p7 = scmp.lt.s32.totalorder %s3977_s27, %s3977_s27 }
  0x13   :  { %p3984_p8 = por %p3983_p7, %p3982_p6 }
  0x15   :  { %p3985_p9 = pnand %p3984_p8, %p3978_p5 }
  0x17   :  { %3988 = shalt.err (!%p3985_p9)
}
  0x18   :  { %s4019_s28 = smov 64   ;;  %s4020_s29 = smov 4  }
  0x19   :  { %40 = dma.hbm_to_vmem [thread:$0]  %s4313_s3, 24576, %s35_s26, [#allocation8], %s4019_s28, %s4019_s28, %s4020_s29  }
  0x1a   :  { %4009 = dma.done.wait [#allocation5], 512  }
  0x1b   :  { %4010 = vsyncadd [#allocation5], 4294966784 }
  0x1c   :  { %4011 = dma.done.wait [#allocation8], 24576  }
  0x1d   :  { %4012 = vsyncadd [#allocation8], 4294942720  ;;  %v185_v0 = vld [vmem:[#allocation4] sm:$0xff]  ;;  %v186_v1 = vld [vmem:[#allocation4 + $0x8] sm:$0xff]  ;;  %s4021_s0 = smov 90   ;;  %s4022_s7 = smov 92  }
  0x1e   :  { %189 = vrot.lane.b32.xlu0 %v185_v0, %s4021_s0  ;;  %153 = vrot.lane.b32.xlu1 %v185_v0, %s4022_s7  ;;  %v634_v2 = vld [vmem:[#allocation4 + $0x10] sm:$0xff]  ;;  %v4023_v3 = vmov 0.0   ;;  %s4024_s3 = smov 91   ;;  %s4025_s8 = smov 109   ;;  %v55_v4 = vld [vmem:[#allocation4 + $0x8] sm:$0xf] }
  0x1f   :  { %513 = vst [vmem:[#allocation3] sm:$0xff] %v634_v2  ;;  %3675 = vmatprep.subr.bf16.mxu1 %v4023_v3  ;;  %s4026_s9 = smov 108   ;;  %57 = vst [vmem:[#allocation3 + $0x8] sm:$0xf] %v55_v4  ;;  %s4027_s10 = smov 126   ;;  %v4029_v5 = vmov 0  }
  0x20   :  { %s4028_s11 = smov 110   ;;  %346 = vmatprep.mubr.bf16.mxu0 %v4029_v5  ;;  %3723 = vset.pattern.permute.xlu0 %v4029_v5  ;;  %s4030_s12 = smov 127   ;;  %v635_v6 = vld [vmem:[#allocation4 + $0x18] sm:$0xff]  ;;  %vm4031_vm0 = vmmov 0   ;;  %v222_v7 = vld [vmem:[%s4312_s2] sm:$0xff]  ;;  %vm68_vm1 = vcmask 1043456  }
  0x21   :  { %3724 = vset.pattern.permute.xlu1 %v4029_v5  ;;  %3685 = vmatprep.mubr.msk.bf16.mxu1 %vm4031_vm0, %v4023_v3  ;;  %vm196_vm2 = vcmask 736256   ;;  %vm160_vm3 = vcmask 752640   ;;  %vm178_vm4 = vcmask 744448   ;;  %vm124_vm5 = vcmask 891904  }
  0x22   :  { %191 = vrot.lane.b32.xlu0 %v186_v1, %s4021_s0  ;;  %155 = vrot.lane.b32.xlu1 %v186_v1, %s4022_s7  ;;  %vm142_vm6 = vcmask 883712   ;;  %vm88_vm7 = vcmask 1031168   ;;  %vm106_vm8 = vcmask 900096   ;;  %vm70_vm9 = vcmask 1039360  }
  0x23   :  { %vm300_vm10 = vcmask 588800  }
  0x26   :  { %171 = vrot.lane.b32.xlu0 %v185_v0, %s4024_s3  ;;  %173 = vrot.lane.b32.xlu1 %v186_v1, %s4024_s3 }
  0x2a   :  { %119 = vrot.lane.b32.xlu1 %v186_v1, %s4025_s8  ;;  %117 = vrot.lane.b32.xlu0 %v185_v0, %s4025_s8 }
  0x2e   :  { %137 = vrot.lane.b32.xlu1 %v186_v1, %s4026_s9  ;;  %135 = vrot.lane.b32.xlu0 %v185_v0, %s4026_s9 }
  0x32   :  { %83 = vrot.lane.b32.xlu1 %v186_v1, %s4027_s10  ;;  %81 = vrot.lane.b32.xlu0 %v185_v0, %s4027_s10 }
  0x36   :  { %101 = vrot.lane.b32.xlu1 %v186_v1, %s4028_s11  ;;  %99 = vrot.lane.b32.xlu0 %v185_v0, %s4028_s11 }
  0x3a   :  { %64 = vrot.lane.b32.xlu1 %v186_v1, %s4030_s12  ;;  %62 = vrot.lane.b32.xlu0 %v185_v0, %s4030_s12 }
  0x3e   :  { %640 = vrot.lane.b32.xlu1 %v635_v6, %s4021_s0  ;;  %638 = vrot.lane.b32.xlu0 %v634_v2, %s4021_s0 }
  0x42   :  { %606 = vrot.lane.b32.xlu1 %v635_v6, %s4022_s7  ;;  %604 = vrot.lane.b32.xlu0 %v634_v2, %s4022_s7 }
  0x46   :  { %623 = vrot.lane.b32.xlu1 %v635_v6, %s4024_s3  ;;  %621 = vrot.lane.b32.xlu0 %v634_v2, %s4024_s3 }
  0x4a   :  { %572 = vrot.lane.b32.xlu1 %v635_v6, %s4025_s8  ;;  %570 = vrot.lane.b32.xlu0 %v634_v2, %s4025_s8 }
  0x4e   :  { %589 = vrot.lane.b32.xlu1 %v635_v6, %s4026_s9  ;;  %587 = vrot.lane.b32.xlu0 %v634_v2, %s4026_s9 }
  0x52   :  { %538 = vrot.lane.b32.xlu1 %v635_v6, %s4027_s10  ;;  %536 = vrot.lane.b32.xlu0 %v634_v2, %s4027_s10 }
  0x56   :  { %555 = vrot.lane.b32.xlu1 %v635_v6, %s4028_s11  ;;  %553 = vrot.lane.b32.xlu0 %v634_v2, %s4028_s11 }
  0x5a   :  { %521 = vrot.lane.b32.xlu1 %v635_v6, %s4030_s12  ;;  %519 = vrot.lane.b32.xlu0 %v634_v2, %s4030_s12 }
  0x5e   :  { %225 = vperm.xlu0 %3723, %v222_v7   ;;  %673 = vperm.xlu1 %3724, %v222_v7  }
  0x90   :  { %v190_v8 = vpop.permute.xlu0 %189  ;;  %v154_v9 = vpop.permute.xlu1 %153 }
  0x91   :  { %v193_v10 = vrot.slane %v190_v8, 4  ;;  %v157_v11 = vrot.slane %v154_v9, 4 }
  0x94   :  { %v192_v12 = vpop.permute.xlu0 %191  ;;  %v156_v13 = vpop.permute.xlu1 %155 }
  0x95   :  { %v194_v14 = vrot.slane %v192_v12, 4  ;;  %v158_v15 = vrot.slane %v156_v13, 4 }
  0x97   :  { %v195_v16 = vsel %vm68_vm1, %v193_v10, %v194_v14  ;;  %v198_v17 = vsel %vm196_vm2, %v192_v12, %v194_v14  ;;  %v162_v18 = vsel %vm160_vm3, %v156_v13, %v158_v15  ;;  %v159_v20 = vsel %vm68_vm1, %v157_v11, %v158_v15 }
  0x98   :  { %v197_v19 = vsel %vm196_vm2, %v190_v8, %v195_v16  ;;  %202 = vst [vmem:[#allocation3 + $0x68] sm:$0xf] %v198_v17  ;;  %166 = vst [vmem:[#allocation3 + $0x50] sm:$0xf] %v162_v18  ;;  %v172_v21 = vpop.permute.xlu0 %171  ;;  %v174_v22 = vpop.permute.xlu1 %173  ;;  %v161_v30 = vsel %vm160_vm3, %v154_v9, %v159_v20 }
  0x99   :  { %v175_v23 = vrot.slane %v172_v21, 4  ;;  %v176_v24 = vrot.slane %v174_v22, 4  ;;  %v3176_v25 = vcombine.high %v197_v19, %v197_v19  ;;  %v3175_v26 = vcombine.low %v197_v19, %v197_v19  ;;  %v3947_v19 = vld [vmem:[#allocation4] sm:$0xff] }
  0x9b   :  { %v177_v27 = vsel %vm68_vm1, %v175_v23, %v176_v24  ;;  %v180_v28 = vsel %vm178_vm4, %v174_v22, %v176_v24  ;;  %3178 = vmatprep.subr.msk.bf16.mxu0 %vm68_vm1, %v3176_v25  ;;  %v306_v29 = vsel %vm68_vm1, %v3175_v26, 0 }
  0x9c   :  { %v179_v31 = vsel %vm178_vm4, %v172_v21, %v177_v27  ;;  %184 = vst [vmem:[#allocation3 + $0x5c] sm:$0xf] %v180_v28  ;;  %v120_v32 = vpop.permute.xlu1 %119  ;;  %v118_v33 = vpop.permute.xlu0 %117  ;;  %321 = vmatpush1.bf16.msra.mxu0 %v306_v29  ;;  %v203_v28 = vld [vmem:[%s4311_s1] sm:$0xf] }
  0x9d   :  { %v122_v34 = vrot.slane %v120_v32, 4  ;;  %v121_v35 = vrot.slane %v118_v33, 4  ;;  %v3173_v36 = vcombine.high %v161_v30, %v179_v31  ;;  %v3172_v37 = vcombine.low %v161_v30, %v179_v31  ;;  %v512_v31 = vld [vmem:[#allocation4 + $0x18] sm:$0xf] }
  0x9f   :  { %v126_v38 = vsel %vm124_vm5, %v120_v32, %v122_v34  ;;  %v3725_v39 = vld [vmem:[#allocation3 + $0x68] ss:$0 sps:$4 sm:$0xff]   ;;  %322 = vmatprep.subr.bf16.mxu0 %v3173_v36  ;;  %v123_v42 = vsel %vm68_vm1, %v121_v35, %v122_v34 }
  0xa0   :  { %130 = vst [vmem:[#allocation3 + $0x38] sm:$0xf] %v126_v38  ;;  %v138_v40 = vpop.permute.xlu1 %137  ;;  %v136_v41 = vpop.permute.xlu0 %135  ;;  %323 = vmatpush1.bf16.msra.mxu0 %v3172_v37  ;;  %v312_v45 = vsel %vm68_vm1, %v3725_v39, 0  ;;  %v125_v49 = vsel %vm124_vm5, %v118_v33, %v123_v42 }
  0xa1   :  { %v140_v43 = vrot.slane %v138_v40, 4  ;;  %v139_v44 = vrot.slane %v136_v41, 4  ;;  %3676 = vmatpush3.bf16.msra.mxu1 %v312_v45 }
  0xa2   :  { %3677 = vmatprep.subr.bf16.mxu1 %v4023_v3 }
  0xa3   :  { %v144_v46 = vsel %vm142_vm6, %v138_v40, %v140_v43  ;;  %v141_v47 = vsel %vm68_vm1, %v139_v44, %v140_v43  ;;  %v3726_v48 = vld [vmem:[#allocation3 + $0x50] ss:$12 sps:$4 sm:$0xff]  }
  0xa4   :  { %148 = vst [vmem:[#allocation3 + $0x44] sm:$0xf] %v144_v46  ;;  %v143_v50 = vsel %vm142_vm6, %v136_v41, %v141_v47  ;;  %v84_v51 = vpop.permute.xlu1 %83  ;;  %v82_v52 = vpop.permute.xlu0 %81 }
  0xa5   :  { %v86_v53 = vrot.slane %v84_v51, 4  ;;  %v85_v54 = vrot.slane %v82_v52, 4  ;;  %v3170_v55 = vcombine.high %v125_v49, %v143_v50  ;;  %v3169_v56 = vcombine.low %v125_v49, %v143_v50  ;;  %3678 = vmatpush3.bf16.msra.mxu1 %v3726_v48 }
  0xa6   :  { %3679 = vmatprep.subr.bf16.mxu1 %v4023_v3 }
  0xa7   :  { %v90_v57 = vsel %vm88_vm7, %v84_v51, %v86_v53  ;;  %324 = vmatprep.subr.bf16.mxu0 %v3170_v55  ;;  %v87_v60 = vsel %vm68_vm1, %v85_v54, %v86_v53 }
  0xa8   :  { %94 = vst [vmem:[#allocation3 + $0x20] sm:$0xf] %v90_v57  ;;  %v102_v58 = vpop.permute.xlu1 %101  ;;  %v100_v59 = vpop.permute.xlu0 %99  ;;  %325 = vmatpush1.bf16.msra.mxu0 %v3169_v56  ;;  %v89_v2 = vsel %vm88_vm7, %v82_v52, %v87_v60 }
  0xa9   :  { %v104_v61 = vrot.slane %v102_v58, 4  ;;  %v103_v62 = vrot.slane %v100_v59, 4 }
  0xab   :  { %v108_v63 = vsel %vm106_vm8, %v102_v58, %v104_v61  ;;  %v105_v0 = vsel %vm68_vm1, %v103_v62, %v104_v61  ;;  %v3727_v1 = vld [vmem:[#allocation3 + $0x38] ss:$12 sps:$4 sm:$0xff]  }
  0xac   :  { %112 = vst [vmem:[#allocation3 + $0x2c] sm:$0xf] %v108_v63  ;;  %v107_v4 = vsel %vm106_vm8, %v100_v59, %v105_v0  ;;  %v65_v6 = vpop.permute.xlu1 %64  ;;  %v63_v7 = vpop.permute.xlu0 %62  ;;  %3680 = vmatpush3.bf16.msra.mxu1 %v3727_v1 }
  0xad   :  { %v67_v8 = vrot.slane %v65_v6, 4  ;;  %v66_v9 = vrot.slane %v63_v7, 4  ;;  %v3167_v10 = vcombine.high %v89_v2, %v107_v4  ;;  %v3166_v11 = vcombine.low %v89_v2, %v107_v4  ;;  %3681 = vmatprep.subr.bf16.mxu1 %v4023_v3 }
  0xaf   :  { %v72_v12 = vsel %vm70_vm9, %v65_v6, %v67_v8  ;;  %v69_v13 = vsel %vm68_vm1, %v66_v9, %v67_v8  ;;  %326 = vmatprep.subr.bf16.mxu0 %v3167_v10 }
  0xb0   :  { %76 = vst [vmem:[#allocation3 + $0x14] sm:$0xf] %v72_v12  ;;  %v71_v14 = vsel %vm70_vm9, %v63_v7, %v69_v13  ;;  %v641_v15 = vpop.permute.xlu1 %640  ;;  %v639_v16 = vpop.permute.xlu0 %638  ;;  %327 = vmatpush1.bf16.msra.mxu0 %v3166_v11 }
  0xb1   :  { %v643_v17 = vrot.slane %v641_v15, 4  ;;  %v642_v18 = vrot.slane %v639_v16, 4  ;;  %v3164_v20 = vcombine.high %v3947_v19, %v71_v14  ;;  %v3163_v21 = vcombine.low %v3947_v19, %v71_v14 }
  0xb3   :  { %v646_v22 = vsel %vm196_vm2, %v641_v15, %v643_v17  ;;  %v644_v23 = vsel %vm68_vm1, %v642_v18, %v643_v17  ;;  %v3728_v24 = vld [vmem:[#allocation3 + $0x20] ss:$12 sps:$4 sm:$0xff]   ;;  %328 = vmatprep.subr.bf16.mxu0 %v3164_v20 }
  0xb4   :  { %650 = vst [vmem:[#allocation3 + $0x68] sm:$0xf] %v646_v22  ;;  %v645_v25 = vsel %vm196_vm2, %v639_v16, %v644_v23  ;;  %v607_v26 = vpop.permute.xlu1 %606  ;;  %v605_v27 = vpop.permute.xlu0 %604  ;;  %329 = vmatpush1.bf16.msra.mxu0 %v3163_v21  ;;  %3682 = vmatpush3.bf16.msra.mxu1 %v3728_v24 }
  0xb5   :  { %v609_v29 = vrot.slane %v607_v26, 4  ;;  %v608_v30 = vrot.slane %v605_v27, 4  ;;  %v3197_v32 = vcombine.high %v645_v25, %v645_v25  ;;  %v3196_v33 = vcombine.low %v645_v25, %v645_v25  ;;  %3683 = vmatprep.subr.bf16.mxu1 %v4023_v3 }
  0xb7   :  { %v612_v34 = vsel %vm160_vm3, %v607_v26, %v609_v29  ;;  %v610_v35 = vsel %vm68_vm1, %v608_v30, %v609_v29  ;;  %v3729_v36 = vld [vmem:[#allocation3 + $0x8] ss:$12 sps:$4 sm:$0xff]   ;;  %3179 = vmatmul.mubr.msk.bf16.vlgmr.msra.gmra.mxu0 %vm300_vm10, %v203_v28  ;;  %3199 = vmatprep.subr.msk.bf16.mxu0 %vm68_vm1, %v3197_v32  ;;  %v752_v37 = vsel %vm68_vm1, %v3196_v33, 0  ;;  %v651_v32 = vld [vmem:[%s4311_s1] sm:$0xf] }
  0xb8   :  { %616 = vst [vmem:[#allocation3 + $0x50] sm:$0xf] %v612_v34  ;;  %v611_v38 = vsel %vm160_vm3, %v605_v27, %v610_v35  ;;  %v624_v39 = vpop.permute.xlu1 %623  ;;  %v622_v40 = vpop.permute.xlu0 %621  ;;  %514 = vst [vmem:[#allocation3 + $0x8] sm:$0xf] %v512_v31  ;;  %767 = vmatpush1.bf16.msra.mxu0 %v752_v37  ;;  %792 = vmatprep.mubr.bf16.mxu0 %v4029_v5  ;;  %v3735_v34 = vld [vmem:[#allocation7 + $0x78] sm:$0xff]  }
  0xb9   :  { %v626_v41 = vrot.slane %v624_v39, 4  ;;  %v625_v42 = vrot.slane %v622_v40, 4  ;;  %3684 = vmatpush3.bf16.msra.mxu1 %v3729_v36  ;;  %v3736_v35 = vld [vmem:[#allocation7 + $0x38] sm:$0xff]  }
  0xba   :  { %3689 = vmatprep.subr.bf16.mxu1 %v4023_v3  ;;  %v3737_v36 = vld [vmem:[#allocation7 + $0xf8] sm:$0xff]  }
  0xbb   :  { %v629_v43 = vsel %vm178_vm4, %v624_v39, %v626_v41  ;;  %v627_v44 = vsel %vm68_vm1, %v625_v42, %v626_v41  ;;  %v3730_v45 = vld [vmem:[#allocation3 + $0x68] ss:$0 sps:$4 sm:$0xff]   ;;  %v3740_v39 = vld [vmem:[#allocation7 + $0x30] sm:$0xff]   ;;  %v3743_v41 = vld [vmem:[#allocation7 + $0x68] sm:$0xff]  }
  0xbc   :  { %633 = vst [vmem:[#allocation3 + $0x5c] sm:$0xf] %v629_v43  ;;  %v628_v46 = vsel %vm178_vm4, %v622_v40, %v627_v44  ;;  %v573_v47 = vpop.permute.xlu1 %572  ;;  %v571_v48 = vpop.permute.xlu0 %570  ;;  %3686 = vmatmul.mubr.msk.bf16.vlgmr.msra.gmra.mxu1 %vm300_vm10, %v203_v28  ;;  %v758_v5 = vsel %vm68_vm1, %v3730_v45, 0  ;;  %v3948_v28 = vld [vmem:[#allocation3] sm:$0xff]  ;;  %v3744_v42 = vld [vmem:[#allocation7 + $0x28] sm:$0xff]   ;;  %v3747_v45 = vld [vmem:[#allocation7 + $0x60] sm:$0xff]  }
  0xbd   :  { %v575_v49 = vrot.slane %v573_v47, 4  ;;  %v574_v50 = vrot.slane %v571_v48, 4  ;;  %v3193_v51 = vcombine.low %v611_v38, %v628_v46  ;;  %3699 = vmatprep.mubr.msk.bf16.mxu1 %vm4031_vm0, %v4023_v3  ;;  %3690 = vmatpush3.bf16.msra.mxu1 %v758_v5  ;;  %v3194_v52 = vcombine.high %v611_v38, %v628_v46  ;;  %v3738_v37 = vld [vmem:[#allocation7 + $0xb8] sm:$0xff]   ;;  %v3739_v38 = vld [vmem:[#allocation7 + $0x70] sm:$0xff]   ;;  %v3745_v43 = vld [vmem:[#allocation7 + $0xe8] sm:$0xff]  }
  0xbe   :  { %3691 = vmatprep.subr.bf16.mxu1 %v4023_v3  ;;  %v3741_v40 = vld [vmem:[#allocation7 + $0xf0] sm:$0xff]   ;;  %v3746_v44 = vld [vmem:[#allocation7 + $0xa8] sm:$0xff]   ;;  %v3748_v46 = vld [vmem:[#allocation7 + $0x20] sm:$0xff]  }
  0xbf   :  { %v578_v53 = vsel %vm124_vm5, %v573_v47, %v575_v49  ;;  %v576_v54 = vsel %vm68_vm1, %v574_v50, %v575_v49  ;;  %768 = vmatprep.subr.bf16.mxu0 %v3194_v52  ;;  %v3749_v47 = vld [vmem:[#allocation7 + $0xe0] sm:$0xff]   ;;  %v3751_v49 = vld [vmem:[#allocation7 + $0x58] sm:$0xff]   ;;  %v3755_v52 = vld [vmem:[#allocation7 + $0x50] sm:$0xff]  }
  0xc0   :  { %582 = vst [vmem:[#allocation3 + $0x38] sm:$0xf] %v578_v53  ;;  %v577_v55 = vsel %vm124_vm5, %v571_v48, %v576_v54  ;;  %v590_v56 = vpop.permute.xlu1 %589  ;;  %v588_v57 = vpop.permute.xlu0 %587  ;;  %769 = vmatpush1.bf16.msra.mxu0 %v3193_v51  ;;  %v3750_v48 = vld [vmem:[#allocation7 + $0xa0] sm:$0xff]   ;;  %v3752_v50 = vld [vmem:[#allocation7 + $0x18] sm:$0xff]   ;;  %v3756_v53 = vld [vmem:[#allocation7 + $0x10] sm:$0xff]  }
  0xc1   :  { %v592_v58 = vrot.slane %v590_v56, 4  ;;  %v591_v59 = vrot.slane %v588_v57, 4  ;;  %v3753_v5 = vld [vmem:[#allocation7 + $0xd8] sm:$0xff]   ;;  %v3757_v54 = vld [vmem:[#allocation7 + $0xd0] sm:$0xff]  }
  0xc2   :  { %v3754_v51 = vld [vmem:[#allocation7 + $0x98] sm:$0xff]  }
  0xc3   :  { %v595_v60 = vsel %vm142_vm6, %v590_v56, %v592_v58  ;;  %v593_v61 = vsel %vm68_vm1, %v591_v59, %v592_v58  ;;  %v3731_v62 = vld [vmem:[#allocation3 + $0x50] ss:$12 sps:$4 sm:$0xff]   ;;  %v3759_v56 = vld [vmem:[#allocation7 + $0x48] sm:$0xff]  }
  0xc4   :  { %599 = vst [vmem:[#allocation3 + $0x44] sm:$0xf] %v595_v60  ;;  %v594_v63 = vsel %vm142_vm6, %v588_v57, %v593_v61  ;;  %v539_v0 = vpop.permute.xlu1 %538  ;;  %v537_v1 = vpop.permute.xlu0 %536  ;;  %3692 = vmatpush3.bf16.msra.mxu1 %v3731_v62  ;;  %v3760_v57 = vld [vmem:[#allocation7 + $0x8] sm:$0xff]   ;;  %v3763_v59 = vld [vmem:[#allocation7 + $0x40] sm:$0xff]  }
  0xc5   :  { %v541_v2 = vrot.slane %v539_v0, 4  ;;  %v540_v4 = vrot.slane %v537_v1, 4  ;;  %v3190_v6 = vcombine.low %v577_v55, %v594_v63  ;;  %v3191_v7 = vcombine.high %v577_v55, %v594_v63  ;;  %3693 = vmatprep.subr.bf16.mxu1 %v4023_v3  ;;  %v3758_v55 = vld [vmem:[#allocation7 + $0x90] sm:$0xff]   ;;  %v3761_v58 = vld [vmem:[#allocation7 + $0xc8] sm:$0xff]   ;;  %v3765_v61 = vld [vmem:[#allocation7 + $0xc0] sm:$0xff]  }
  0xc6   :  { %v3762_v60 = vld [vmem:[#allocation7 + $0x88] sm:$0xff]   ;;  %v3764_v62 = vld [vmem:[#allocation7] sm:$0xff]  }
  0xc7   :  { %v544_v8 = vsel %vm88_vm7, %v539_v0, %v541_v2  ;;  %v542_v9 = vsel %vm68_vm1, %v540_v4, %v541_v2  ;;  %770 = vmatprep.subr.bf16.mxu0 %v3191_v7  ;;  %v3766_v63 = vld [vmem:[#allocation7 + $0x80] sm:$0xff]   ;;  %v3767_v0 = vld [vmem:[#allocation7 + $0x178] sm:$0xff]  }
  0xc8   :  { %548 = vst [vmem:[#allocation3 + $0x20] sm:$0xf] %v544_v8  ;;  %v543_v10 = vsel %vm88_vm7, %v537_v1, %v542_v9  ;;  %v556_v11 = vpop.permute.xlu1 %555  ;;  %v554_v12 = vpop.permute.xlu0 %553  ;;  %771 = vmatpush1.bf16.msra.mxu0 %v3190_v6  ;;  %v3770_v1 = vld [vmem:[#allocation7 + $0x1f8] sm:$0xff]  }
  0xc9   :  { %v558_v13 = vrot.slane %v556_v11, 4  ;;  %v557_v14 = vrot.slane %v554_v12, 4 }
  0xcb   :  { %v561_v15 = vsel %vm106_vm8, %v556_v11, %v558_v13  ;;  %v559_v16 = vsel %vm68_vm1, %v557_v14, %v558_v13  ;;  %v3732_v17 = vld [vmem:[#allocation3 + $0x38] ss:$12 sps:$4 sm:$0xff]  }
  0xcc   :  { %565 = vst [vmem:[#allocation3 + $0x2c] sm:$0xf] %v561_v15  ;;  %v560_v18 = vsel %vm106_vm8, %v554_v12, %v559_v16  ;;  %v522_v19 = vpop.permute.xlu1 %521  ;;  %v520_v20 = vpop.permute.xlu0 %519  ;;  %3694 = vmatpush3.bf16.msra.mxu1 %v3732_v17 }
  0xcd   :  { %v524_v21 = vrot.slane %v522_v19, 4  ;;  %v523_v22 = vrot.slane %v520_v20, 4  ;;  %v3187_v23 = vcombine.low %v543_v10, %v560_v18  ;;  %v3188_v24 = vcombine.high %v543_v10, %v560_v18  ;;  %3695 = vmatprep.subr.bf16.mxu1 %v4023_v3 }
  0xcf   :  { %v527_v25 = vsel %vm70_vm9, %v522_v19, %v524_v21  ;;  %v525_v26 = vsel %vm68_vm1, %v523_v22, %v524_v21  ;;  %772 = vmatprep.subr.bf16.mxu0 %v3188_v24  ;;  %v4032_v22 = vmov 1966171168   ;;  %v420_v24 = vlaneseq }
  0xd0   :  { %531 = vst [vmem:[#allocation3 + $0x14] sm:$0xf] %v527_v25  ;;  %v526_v27 = vsel %vm70_vm9, %v520_v20, %v525_v26  ;;  %773 = vmatpush1.bf16.msra.mxu0 %v3187_v23  ;;  %v418_v23 = vunpack.c.l.s4 %v4032_v22 }
  0xd1   :  { %v3184_v29 = vcombine.low %v3948_v28, %v526_v27  ;;  %v3185_v30 = vcombine.high %v3948_v28, %v526_v27  ;;  %v4172_v27 = vshrl.u32 %v420_v24, 7  ;;  %vm4181_vm14 = vcmp.lt.s32.totalorder %v420_v24, 384 }
  0xd2   :  { %v419_v26 = vunpack.c.0.s8 %v418_v23 }
  0xd3   :  { %v3733_v31 = vld [vmem:[#allocation3 + $0x20] ss:$12 sps:$4 sm:$0xff]   ;;  %774 = vmatprep.subr.bf16.mxu0 %v3185_v30 }
  0xd4   :  { %775 = vmatpush1.bf16.msra.mxu0 %v3184_v29  ;;  %3696 = vmatpush3.bf16.msra.mxu1 %v3733_v31  ;;  %v4175_v31 = vsub.s32 %v419_v26, %v4172_v27 }
  0xd5   :  { %3697 = vmatprep.subr.bf16.mxu1 %v4023_v3  ;;  %3411 = vmatprep.subr.bf16.mxu0 %v3735_v34  ;;  %v3742_v3 = vld [vmem:[#allocation7 + $0xb0] sm:$0xff]  }
  0xd7   :  { %v3734_v33 = vld [vmem:[#allocation3 + $0x8] ss:$12 sps:$4 sm:$0xff]   ;;  %3200 = vmatmul.mubr.msk.bf16.vlgmr.msra.gmra.mxu0 %vm300_vm10, %v651_v32 }
  0xd8   :  { %3698 = vmatpush3.bf16.msra.mxu1 %v3734_v33  ;;  %3412 = vmatpush3.bf16.msra.mxu0 %v3736_v35 }
  0xd9   :  { %3433 = vmatprep.subr.bf16.mxu1 %v3737_v36  ;;  %3413 = vmatprep.subr.bf16.mxu0 %v3739_v38  ;;  %v226_v2 = vpop.permute.xlu0 %225 }
  0xdb   :  { %3700 = vmatmul.mubr.msk.bf16.vlgmr.msra.gmra.mxu1 %vm300_vm10, %v651_v32 }
  0xdc   :  { %3434 = vmatpush3.bf16.msra.mxu1 %v3738_v37  ;;  %3414 = vmatpush3.bf16.msra.mxu0 %v3740_v39 }
  0xdd   :  { %3435 = vmatprep.subr.bf16.mxu1 %v3741_v40  ;;  %3415 = vmatprep.subr.bf16.mxu0 %v3743_v41 }
  0xe0   :  { %3436 = vmatpush3.bf16.msra.mxu1 %v3742_v3  ;;  %3416 = vmatpush3.bf16.msra.mxu0 %v3744_v42 }
  0xe1   :  { %3437 = vmatprep.subr.bf16.mxu1 %v3745_v43  ;;  %3417 = vmatprep.subr.bf16.mxu0 %v3747_v45  ;;  %v674_v45 = vpop.permute.xlu1 %673 }
  0xe4   :  { %3438 = vmatpush3.bf16.msra.mxu1 %v3746_v44  ;;  %3418 = vmatpush3.bf16.msra.mxu0 %v3748_v46 }
  0xe5   :  { %3439 = vmatprep.subr.bf16.mxu1 %v3749_v47  ;;  %3419 = vmatprep.subr.bf16.mxu0 %v3751_v49 }
  0xe8   :  { %3440 = vmatpush3.bf16.msra.mxu1 %v3750_v48  ;;  %3420 = vmatpush3.bf16.msra.mxu0 %v3752_v50 }
  0xe9   :  { %3441 = vmatprep.subr.bf16.mxu1 %v3753_v5  ;;  %3421 = vmatprep.subr.bf16.mxu0 %v3755_v52 }
  0xec   :  { %3442 = vmatpush3.bf16.msra.mxu1 %v3754_v51  ;;  %3422 = vmatpush3.bf16.msra.mxu0 %v3756_v53 }
  0xed   :  { %3443 = vmatprep.subr.bf16.mxu1 %v3757_v54  ;;  %3423 = vmatprep.subr.bf16.mxu0 %v3759_v56 }
  0xf0   :  { %3444 = vmatpush3.bf16.msra.mxu1 %v3758_v55  ;;  %3424 = vmatpush3.bf16.msra.mxu0 %v3760_v57 }
  0xf1   :  { %3445 = vmatprep.subr.bf16.mxu1 %v3761_v58  ;;  %3425 = vmatprep.subr.bf16.mxu0 %v3763_v59 }
  0xf4   :  { %3446 = vmatpush3.bf16.msra.mxu1 %v3762_v60  ;;  %3426 = vmatpush3.bf16.msra.mxu0 %v3764_v62 }
  0xf5   :  { %3447 = vmatprep.subr.bf16.mxu1 %v3765_v61  ;;  %3455 = vmatprep.subr.bf16.mxu0 %v3767_v0 }
  0xf8   :  { %3448 = vmatpush3.bf16.msra.mxu1 %v3766_v63 }
  0xf9   :  { %3477 = vmatprep.subr.bf16.mxu1 %v3770_v1 }
 0x177   :  { %v348_v4 = vpop.f32.mrf.mxu0 }
 0x178   :  { %v349_v6 = vadd.f32 %v348_v4, %v226_v2 }
 0x179   :  { %v350_v7 = vpop.f32.mrf.mxu0 }
 0x17a   :  { %v398_v8 = vmin.f32 %v349_v6, 0.0  ;;  %v351_v9 = vadd.f32 %v350_v7, %v226_v2  ;;  %vm395_vm11 = vcmp.gt.f32.partialorder %v349_v6, 0.0 }
 0x17b   :  { %v352_v10 = vpop.f32.mrf.mxu0 }
 0x17c   :  { %v389_v11 = vpop.f32.mrf.mxu1  ;;  %v401_v12 = vmul.f32 1.442695, %v398_v8  ;;  %v399_v13 = vmin.f32 %v351_v9, 0.0  ;;  %vm396_vm12 = vcmp.gt.f32.partialorder %v351_v9, 0.0 }
 0x17d   :  { %v390_v14 = vadd.f32 %v389_v11, %v226_v2  ;;  %v353_v15 = vpop.f32.mrf.mxu0 }
 0x17e   :  { %3933 = vpow2.f32 %v401_v12  ;;  %v403_v16 = vmul.f32 1.442695, %v399_v13  ;;  %v3687_v17 = vpop.f32.mrf.mxu1 }
 0x17f   :  { %v400_v18 = vmin.f32 %v390_v14, 0.0  ;;  %vm397_vm13 = vcmp.gt.f32.partialorder %v390_v14, 0.0 }
 0x180   :  { %3935 = vpow2.f32 %v403_v16  ;;  %v392_v19 = vpop.f32.mrf.mxu1 }
 0x181   :  { %v405_v20 = vmul.f32 1.442695, %v400_v18 }
 0x182   :  { %v3688_v21 = vpop.f32.mrf.mxu1 }
 0x183   :  { %3937 = vpow2.f32 %v405_v20 }
 0x18b   :  { %v3934_v25 = vpop.eup %3933 }
 0x18c   :  { %v3181_v28 = vadd.f32 -1.0, %v3934_v25  ;;  %v4033_v25 = vmov 1983009808  }
 0x18d   :  { %v3936_v29 = vpop.eup %3935  ;;  %v967_v26 = vunpack.c.l.s4 %v4033_v25  ;;  %v3796_v25 = vld [vmem:[#allocation7 + $0x188] sm:$0xff]  }
 0x18e   :  { %v3182_v30 = vadd.f32 -1.0, %v3936_v29  ;;  %v410_v33 = vsel %vm395_vm11, %v349_v6, %v3181_v28 }
 0x190   :  { %v3938_v32 = vpop.eup %3937  ;;  %v411_v34 = vsel %vm396_vm12, %v351_v9, %v3182_v30 }
 0x191   :  { %v3183_v35 = vadd.f32 -1.0, %v3938_v32  ;;  %v416_v36 = vcombine.low %v410_v33, %v411_v34  ;;  %v464_v37 = vcombine.high %v410_v33, %v411_v34 }
 0x193   :  { %v412_v38 = vsel %vm397_vm13, %v390_v14, %v3183_v35  ;;  %v423_v39 = vrot.slane %v416_v36, %v4175_v31  ;;  %v472_v44 = vrot.slane %v464_v37, %v4175_v31  ;;  %v968_v37 = vunpack.c.0.s8 %v967_v26 }
 0x194   :  { %v430_v40 = vrot.slane %v412_v38, %v4175_v31  ;;  %v465_v3 = vcombine.high %v412_v38, %v412_v38 }
 0x196   :  { %v479_v41 = vrot.slane %v465_v3, %v4175_v31  ;;  %v431_v42 = vcombine.low %v423_v39, %v430_v40  ;;  %v445_v43 = vcombine.high %v423_v39, %v430_v40 }
 0x197   :  { %v794_v47 = vpop.f32.mrf.mxu0 }
 0x198   :  { %v438_v48 = vrot.slane %v431_v42, %v4175_v31  ;;  %v452_v49 = vrot.slane %v445_v43, %v4175_v31  ;;  %v480_v50 = vcombine.low %v472_v44, %v479_v41  ;;  %v491_v5 = vcombine.high %v472_v44, %v479_v41 }
 0x199   :  { %v795_v51 = vadd.f32 %v794_v47, %v674_v45  ;;  %v796_v52 = vpop.f32.mrf.mxu0 }
 0x19a   :  { %444 = vst.msk [vmem:[#allocation2] ss:$2 sm:$0x7] %vm4181_vm14, %v438_v48  ;;  %455 = vst.msk [vmem:[#allocation2 + $0x6] ss:$2 sm:$0x7] %vm4181_vm14, %v452_v49  ;;  %v456_v53 = vcombine.high %v438_v48, %v438_v48  ;;  %v460_v54 = vcombine.high %v452_v49, %v452_v49  ;;  %v487_v55 = vrot.slane %v480_v50, %v4175_v31 }
 0x19b   :  { %v498_v56 = vrot.slane %v491_v5, %v4175_v31  ;;  %v844_v57 = vmin.f32 %v795_v51, 0.0  ;;  %v797_v58 = vadd.f32 %v796_v52, %v674_v45  ;;  %v798_v59 = vpop.f32.mrf.mxu0  ;;  %v835_v62 = vpop.f32.mrf.mxu1  ;;  %vm841_vm15 = vcmp.gt.f32.partialorder %v795_v51, 0.0  ;;  %v3768_v52 = vld [vmem:[#allocation7 + $0x138] sm:$0xff]  }
 0x19c   :  { %459 = vst.msk [vmem:[#allocation2 + $0xc] ss:$2 sm:$0x7] %vm4181_vm14, %v456_v53  ;;  %463 = vst.msk [vmem:[#allocation2 + $0x12] ss:$2 sm:$0x7] %vm4181_vm14, %v460_v54  ;;  %v502_v60 = vcombine.high %v487_v55, %v487_v55  ;;  %v836_v63 = vadd.f32 %v835_v62, %v674_v45 }
 0x19d   :  { %490 = vst.msk [vmem:[#allocation2 + $0x18] ss:$2 sm:$0x7] %vm4181_vm14, %v487_v55  ;;  %501 = vst.msk [vmem:[#allocation2 + $0x1e] ss:$2 sm:$0x7] %vm4181_vm14, %v498_v56  ;;  %v506_v61 = vcombine.high %v498_v56, %v498_v56  ;;  %v799_v2 = vpop.f32.mrf.mxu0  ;;  %v3701_v4 = vpop.f32.mrf.mxu1 }
 0x19e   :  { %v847_v0 = vmul.f32 1.442695, %v844_v57  ;;  %v845_v1 = vmin.f32 %v797_v58, 0.0  ;;  %505 = vst.msk [vmem:[#allocation2 + $0x24] ss:$2 sm:$0x7] %vm4181_vm14, %v502_v60 }
 0x19f   :  { %509 = vst.msk [vmem:[#allocation2 + $0x2a] ss:$2 sm:$0x7] %vm4181_vm14, %v506_v61  ;;  %v846_v6 = vmin.f32 %v836_v63, 0.0  ;;  %v838_v8 = vpop.f32.mrf.mxu1  ;;  %vm842_vm0 = vcmp.gt.f32.partialorder %v797_v58, 0.0  ;;  %vm843_vm1 = vcmp.gt.f32.partialorder %v836_v63, 0.0 }
 0x1a0   :  { %3939 = vpow2.f32 %v847_v0  ;;  %v849_v7 = vmul.f32 1.442695, %v845_v1  ;;  %v3771_v57 = vld [vmem:[#allocation7 + $0x1b8] sm:$0xff]   ;;  %v3775_v61 = vld [vmem:[#allocation7 + $0x1f0] sm:$0xff]   ;;  %v3777_v0 = vld [vmem:[#allocation7 + $0x168] sm:$0xff]  }
 0x1a1   :  { %v851_v9 = vmul.f32 1.442695, %v846_v6  ;;  %v3702_v10 = vpop.f32.mrf.mxu1  ;;  %v3774_v62 = vld [vmem:[#allocation7 + $0x130] sm:$0xff]   ;;  %v3779_v2 = vld [vmem:[#allocation7 + $0x1e8] sm:$0xff]   ;;  %v3781_v6 = vld [vmem:[#allocation7 + $0x160] sm:$0xff]  }
 0x1a2   :  { %3941 = vpow2.f32 %v849_v7  ;;  %v3776_v1 = vld [vmem:[#allocation7 + $0x1b0] sm:$0xff]   ;;  %v3778_v4 = vld [vmem:[#allocation7 + $0x128] sm:$0xff]   ;;  %v3783_v8 = vld [vmem:[#allocation7 + $0x1e0] sm:$0xff]  }
 0x1a3   :  { %3943 = vpow2.f32 %v851_v9  ;;  %v3780_v7 = vld [vmem:[#allocation7 + $0x1a8] sm:$0xff]   ;;  %v3782_v9 = vld [vmem:[#allocation7 + $0x120] sm:$0xff]   ;;  %v3785_v10 = vld [vmem:[#allocation7 + $0x158] sm:$0xff]  }
 0x1ad   :  { %v3940_v11 = vpop.eup %3939 }
 0x1ae   :  { %v3202_v12 = vadd.f32 -1.0, %v3940_v11  ;;  %v3784_v11 = vld [vmem:[#allocation7 + $0x1a0] sm:$0xff]  }
 0x1af   :  { %v3942_v13 = vpop.eup %3941 }
 0x1b0   :  { %v3203_v14 = vadd.f32 -1.0, %v3942_v13  ;;  %v3944_v15 = vpop.eup %3943  ;;  %v856_v17 = vsel %vm841_vm15, %v795_v51, %v3202_v12  ;;  %v3787_v12 = vld [vmem:[#allocation7 + $0x1d8] sm:$0xff]  }
 0x1b1   :  { %v3204_v16 = vadd.f32 -1.0, %v3944_v15  ;;  %v3786_v13 = vld [vmem:[#allocation7 + $0x118] sm:$0xff]  }
 0x1b2   :  { %v857_v18 = vsel %vm842_vm0, %v797_v58, %v3203_v14  ;;  %v3772_v58 = vld [vmem:[#allocation7 + $0x170] sm:$0xff]   ;;  %v3788_v15 = vld [vmem:[#allocation7 + $0x198] sm:$0xff]  }
 0x1b3   :  { %v862_v19 = vcombine.low %v856_v17, %v857_v18  ;;  %v907_v20 = vcombine.high %v856_v17, %v857_v18  ;;  %v858_v21 = vsel %vm843_vm1, %v836_v63, %v3204_v16  ;;  %v3789_v14 = vld [vmem:[#allocation7 + $0x150] sm:$0xff]   ;;  %v3793_v18 = vld [vmem:[#allocation7 + $0x148] sm:$0xff]  }
 0x1b4   :  { %v876_v22 = vrot.slane %v858_v21, %v4175_v31  ;;  %v908_v23 = vcombine.high %v858_v21, %v858_v21  ;;  %v3791_v16 = vld [vmem:[#allocation7 + $0x1d0] sm:$0xff]   ;;  %v3795_v21 = vld [vmem:[#allocation7 + $0x1c8] sm:$0xff]  }
 0x1b5   :  { %v869_v24 = vrot.slane %v862_v19, %v4175_v31  ;;  %v915_v32 = vrot.slane %v907_v20, %v4175_v31  ;;  %v3790_v17 = vld [vmem:[#allocation7 + $0x110] sm:$0xff]  }
 0x1b6   :  { %v922_v28 = vrot.slane %v908_v23, %v4175_v31  ;;  %v3792_v20 = vld [vmem:[#allocation7 + $0x190] sm:$0xff]  }
 0x1b7   :  { %v877_v29 = vcombine.low %v869_v24, %v876_v22  ;;  %v888_v30 = vcombine.high %v869_v24, %v876_v22  ;;  %v3794_v22 = vld [vmem:[#allocation7 + $0x108] sm:$0xff]   ;;  %v3797_v24 = vld [vmem:[#allocation7 + $0x140] sm:$0xff]  }
 0x1b8   :  { %v923_v35 = vcombine.low %v915_v32, %v922_v28  ;;  %v934_v36 = vcombine.high %v915_v32, %v922_v28  ;;  %v3799_v28 = vld [vmem:[#allocation7 + $0x1c0] sm:$0xff]   ;;  %v3801_v32 = vld [vmem:[#allocation7 + $0x278] sm:$0xff]  }
 0x1b9   :  { %v884_v33 = vrot.slane %v877_v29, %v4175_v31  ;;  %v895_v34 = vrot.slane %v888_v30, %v4175_v31  ;;  %v3798_v29 = vld [vmem:[#allocation7 + $0x100] sm:$0xff]  }
 0x1ba   :  { %v930_v40 = vrot.slane %v923_v35, %v4175_v31  ;;  %v941_v3 = vrot.slane %v934_v36, %v4175_v31  ;;  %v4230_v31 = vsub.s32 %v968_v37, %v4172_v27  ;;  %v3803_v35 = vld [vmem:[#allocation7 + $0x2f8] sm:$0xff]  }
 0x1bb   :  { %887 = vst.msk [vmem:[#allocation2 + $0x1] ss:$2 sm:$0x7] %vm4181_vm14, %v884_v33  ;;  %898 = vst.msk [vmem:[#allocation2 + $0x7] ss:$2 sm:$0x7] %vm4181_vm14, %v895_v34  ;;  %v899_v38 = vcombine.high %v884_v33, %v884_v33  ;;  %v903_v39 = vcombine.high %v895_v34, %v895_v34 }
 0x1bc   :  { %933 = vst.msk [vmem:[#allocation2 + $0x19] ss:$2 sm:$0x7] %vm4181_vm14, %v930_v40  ;;  %944 = vst.msk [vmem:[#allocation2 + $0x1f] ss:$2 sm:$0x7] %vm4181_vm14, %v941_v3  ;;  %v945_v41 = vcombine.high %v930_v40, %v930_v40  ;;  %v949_v42 = vcombine.high %v941_v3, %v941_v3 }
 0x1bd   :  { %902 = vst.msk [vmem:[#allocation2 + $0xd] ss:$2 sm:$0x7] %vm4181_vm14, %v899_v38  ;;  %906 = vst.msk [vmem:[#allocation2 + $0x13] ss:$2 sm:$0x7] %vm4181_vm14, %v903_v39 }
 0x1be   :  { %948 = vst.msk [vmem:[#allocation2 + $0x25] ss:$2 sm:$0x7] %vm4181_vm14, %v945_v41  ;;  %952 = vst.msk [vmem:[#allocation2 + $0x2b] ss:$2 sm:$0x7] %vm4181_vm14, %v949_v42 }
 0x1bf   :  { %v3800_v33 = vld [vmem:[#allocation7 + $0x180] sm:$0xff]   ;;  %v3802_v36 = vld [vmem:[#allocation7 + $0x238] sm:$0xff]   ;;  %v3806_v39 = vld [vmem:[#allocation7 + $0x270] sm:$0xff]  }
 0x1c0   :  { %v3804_v3 = vld [vmem:[#allocation7 + $0x2b8] sm:$0xff]   ;;  %v3808_v42 = vld [vmem:[#allocation7 + $0x2f0] sm:$0xff]  }
 0x1c2   :  { %v953_v43 = vld [vmem:[#allocation2] sm:$0xff] }
 0x1c3   :  { %v972_v44 = vrot.slane %v953_v43, %v4230_v31  ;;  %v965_v45 = vcombine.high %v953_v43, %v953_v43 }
 0x1c4   :  { %v954_v47 = vld [vmem:[#allocation2 + $0x8] sm:$0xff]  ;;  %v955_v19 = vld [vmem:[#allocation2 + $0x10] sm:$0xff] }
 0x1c5   :  { %v980_v48 = vcombine.high %v972_v44, %v972_v44  ;;  %v979_v49 = vrot.slane %v965_v45, %v4230_v31  ;;  %v4235_v50 = vrot.slane %v954_v47, %v4230_v31  ;;  %v982_v5 = vcombine.high %v954_v47, %v954_v47  ;;  %v3810_v45 = vld [vmem:[#allocation7 + $0x268] sm:$0xff]   ;;  %v3809_v47 = vld [vmem:[#allocation7 + $0x2b0] sm:$0xff]  }
 0x1c6   :  { %v1091_v27 = vpack.c.bf16 %v972_v44, %v972_v44  ;;  %v999_v23 = vcombine.high %v955_v19, %v955_v19  ;;  %v4245_v26 = vrot.slane %v955_v19, %v4230_v31  ;;  %v3807_v44 = vld [vmem:[#allocation7 + $0x230] sm:$0xff]  }
 0x1c7   :  { %v1092_v51 = vpack.c.bf16 %v980_v48, %v980_v48  ;;  %v981_v53 = vcombine.high %v979_v49, %v979_v49  ;;  %v997_v46 = vcombine.high %v4235_v50, %v4235_v50  ;;  %v4240_v54 = vrot.slane %v982_v5, %v4230_v31  ;;  %v3812_v48 = vld [vmem:[#allocation7 + $0x2e8] sm:$0xff]  }
 0x1c8   :  { %v1093_v59 = vpack.c.bf16 %v979_v49, %v979_v49  ;;  %v4248_v30 = vrot.slane %v999_v23, %v4230_v31  ;;  %v1014_v34 = vcombine.high %v4245_v26, %v4245_v26  ;;  %v1095_v38 = vpack.c.bf16 %v4235_v50, %v4235_v50  ;;  %v3811_v49 = vld [vmem:[#allocation7 + $0x228] sm:$0xff]   ;;  %v3814_v50 = vld [vmem:[#allocation7 + $0x260] sm:$0xff]  }
 0x1c9   :  { %2690 = vmatprep.mubr.bf16.mxu0 %v1092_v51  ;;  %v1094_v55 = vpack.c.bf16 %v981_v53, %v981_v53  ;;  %v1096_v56 = vpack.c.bf16 %v997_v46, %v997_v46  ;;  %v998_v60 = vcombine.high %v4240_v54, %v4240_v54  ;;  %v1097_v41 = vpack.c.bf16 %v4240_v54, %v4240_v54  ;;  %v3813_v5 = vld [vmem:[#allocation7 + $0x2a8] sm:$0xff]   ;;  %v3816_v51 = vld [vmem:[#allocation7 + $0x2e0] sm:$0xff]   ;;  %v3818_v53 = vld [vmem:[#allocation7 + $0x258] sm:$0xff]  }
 0x1ca   :  { %2691 = vmatmul.mubr.bf16.vlgmr.msra.gmra.mxu0 %v1091_v27  ;;  %v1015_v37 = vcombine.high %v4248_v30, %v4248_v30  ;;  %v1100_v40 = vpack.c.bf16 %v1014_v34, %v1014_v34  ;;  %v3817_v46 = vld [vmem:[#allocation7 + $0x2a0] sm:$0xff]   ;;  %v3820_v27 = vld [vmem:[#allocation7 + $0x2d8] sm:$0xff]   ;;  %v1101_v19 = vpack.c.bf16 %v4248_v30, %v4248_v30  ;;  %v3843_v23 = vld [vmem:[#allocation7 + $0x368] sm:$0xff]  }
 0x1cb   :  { %3456 = vmatpush3.bf16.msra.mxu0 %v3768_v52  ;;  %2730 = vmatprep.mubr.bf16.mxu1 %v1094_v55  ;;  %v1098_v63 = vpack.c.bf16 %v998_v60, %v998_v60  ;;  %v3815_v52 = vld [vmem:[#allocation7 + $0x220] sm:$0xff]   ;;  %v3819_v54 = vld [vmem:[#allocation7 + $0x218] sm:$0xff]   ;;  %v3822_v55 = vld [vmem:[#allocation7 + $0x250] sm:$0xff]  }
 0x1cc   :  { %2770 = vmatprep.mubr.bf16.mxu0 %v1096_v56  ;;  %2731 = vmatmul.mubr.bf16.vlgmr.msra.gmra.mxu1 %v1093_v59  ;;  %v1102_v43 = vpack.c.bf16 %v1015_v37, %v1015_v37  ;;  %v3821_v56 = vld [vmem:[#allocation7 + $0x298] sm:$0xff]   ;;  %v3826_v59 = vld [vmem:[#allocation7 + $0x248] sm:$0xff]   ;;  %v3849_v30 = vld [vmem:[#allocation7 + $0x3e0] sm:$0xff]  }
 0x1cd   :  { %3478 = vmatpush3.bf16.msra.mxu1 %v3771_v57  ;;  %3457 = vmatprep.subr.bf16.mxu0 %v3772_v58  ;;  %v3824_v57 = vld [vmem:[#allocation7 + $0x2d0] sm:$0xff]   ;;  %v956_v60 = vld [vmem:[#allocation2 + $0x18] sm:$0xff] }
 0x1ce   :  { %2810 = vmatprep.mubr.bf16.mxu1 %v1098_v63  ;;  %3479 = vmatprep.subr.bf16.mxu1 %v3775_v61  ;;  %v3823_v58 = vld [vmem:[#allocation7 + $0x210] sm:$0xff]   ;;  %v3827_v63 = vld [vmem:[#allocation7 + $0x208] sm:$0xff]   ;;  %v3850_v34 = vld [vmem:[#allocation7 + $0x3a0] sm:$0xff]  }
 0x1cf   :  { %3458 = vmatpush3.bf16.msra.mxu0 %v3774_v62  ;;  %v3825_v61 = vld [vmem:[#allocation7 + $0x290] sm:$0xff]   ;;  %v3828_v62 = vld [vmem:[#allocation7 + $0x2c8] sm:$0xff]  }
 0x1d0   :  { %3459 = vmatprep.subr.bf16.mxu0 %v3777_v0  ;;  %v1016_v0 = vcombine.high %v956_v60, %v956_v60  ;;  %v3855_v37 = vld [vmem:[#allocation7 + $0x350] sm:$0xff]  }
 0x1d1   :  { %3480 = vmatpush3.bf16.msra.mxu1 %v3776_v1  ;;  %v3830_v1 = vld [vmem:[#allocation7 + $0x240] sm:$0xff]  }
 0x1d2   :  { %3481 = vmatprep.subr.bf16.mxu1 %v3779_v2  ;;  %v3829_v2 = vld [vmem:[#allocation7 + $0x288] sm:$0xff]  }
 0x1d3   :  { %3460 = vmatpush3.bf16.msra.mxu0 %v3778_v4  ;;  %v4259_v4 = vrot.slane %v956_v60, %v4230_v31 }
 0x1d4   :  { %3461 = vmatprep.subr.bf16.mxu0 %v3781_v6  ;;  %v3832_v6 = vld [vmem:[#allocation7 + $0x2c0] sm:$0xff]  }
 0x1d5   :  { %3482 = vmatpush3.bf16.msra.mxu1 %v3780_v7  ;;  %v3831_v7 = vld [vmem:[#allocation7 + $0x200] sm:$0xff]  }
 0x1d6   :  { %3483 = vmatprep.subr.bf16.mxu1 %v3783_v8  ;;  %v4262_v8 = vrot.slane %v1016_v0, %v4230_v31  ;;  %v3876_v0 = vld [vmem:[#allocation7 + $0x468] sm:$0xff]  }
 0x1d7   :  { %3462 = vmatpush3.bf16.msra.mxu0 %v3782_v9  ;;  %v3834_v9 = vld [vmem:[#allocation7 + $0x378] sm:$0xff]  }
 0x1d8   :  { %3463 = vmatprep.subr.bf16.mxu0 %v3785_v10  ;;  %v3833_v10 = vld [vmem:[#allocation7 + $0x280] sm:$0xff]   ;;  %v1105_v60 = vpack.c.bf16 %v4262_v8, %v4262_v8 }
 0x1d9   :  { %3484 = vmatpush3.bf16.msra.mxu1 %v3784_v11  ;;  %v1031_v11 = vcombine.high %v4259_v4, %v4259_v4 }
 0x1da   :  { %3485 = vmatprep.subr.bf16.mxu1 %v3787_v12  ;;  %v3836_v12 = vld [vmem:[#allocation7 + $0x3f8] sm:$0xff]  }
 0x1db   :  { %3464 = vmatpush3.bf16.msra.mxu0 %v3786_v13  ;;  %v3835_v13 = vld [vmem:[#allocation7 + $0x338] sm:$0xff]  }
 0x1dc   :  { %3465 = vmatprep.subr.bf16.mxu0 %v3789_v14  ;;  %v1032_v14 = vcombine.high %v4262_v8, %v4262_v8  ;;  %v3882_v8 = vld [vmem:[#allocation7 + $0x4e0] sm:$0xff]  }
 0x1dd   :  { %3486 = vmatpush3.bf16.msra.mxu1 %v3788_v15  ;;  %v1099_v15 = vpack.c.bf16 %v4245_v26, %v4245_v26  ;;  %v3844_v26 = vld [vmem:[#allocation7 + $0x328] sm:$0xff]  }
 0x1de   :  { %3487 = vmatprep.subr.bf16.mxu1 %v3791_v16  ;;  %v3839_v16 = vld [vmem:[#allocation7 + $0x370] sm:$0xff]  }
 0x1df   :  { %3466 = vmatpush3.bf16.msra.mxu0 %v3790_v17  ;;  %v1104_v17 = vpack.c.bf16 %v1031_v11, %v1031_v11  ;;  %v3883_v11 = vld [vmem:[#allocation7 + $0x4a0] sm:$0xff]  }
 0x1e0   :  { %3467 = vmatprep.subr.bf16.mxu0 %v3793_v18  ;;  %v3837_v18 = vld [vmem:[#allocation7 + $0x3b8] sm:$0xff]  }
 0x1e1   :  { %3488 = vmatpush3.bf16.msra.mxu1 %v3792_v20  ;;  %v3841_v20 = vld [vmem:[#allocation7 + $0x3f0] sm:$0xff]  }
 0x1e2   :  { %3489 = vmatprep.subr.bf16.mxu1 %v3795_v21  ;;  %v1106_v21 = vpack.c.bf16 %v1032_v14, %v1032_v14  ;;  %v3888_v14 = vld [vmem:[#allocation7 + $0x450] sm:$0xff]  }
 0x1e3   :  { %3468 = vmatpush3.bf16.msra.mxu0 %v3794_v22  ;;  %v3840_v22 = vld [vmem:[#allocation7 + $0x330] sm:$0xff]  }
 0x1e4   :  { %3469 = vmatprep.subr.bf16.mxu0 %v3797_v24  ;;  %v3842_v24 = vld [vmem:[#allocation7 + $0x3b0] sm:$0xff]  }
 0x1e5   :  { %3490 = vmatpush3.bf16.msra.mxu1 %v3796_v25  ;;  %v3845_v25 = vld [vmem:[#allocation7 + $0x3e8] sm:$0xff]  }
 0x1e6   :  { %3491 = vmatprep.subr.bf16.mxu1 %v3799_v28  ;;  %v3847_v28 = vld [vmem:[#allocation7 + $0x360] sm:$0xff]  }
 0x1e7   :  { %3470 = vmatpush3.bf16.msra.mxu0 %v3798_v29  ;;  %v3846_v29 = vld [vmem:[#allocation7 + $0x3a8] sm:$0xff]  }
 0x1e8   :  { %3499 = vmatprep.subr.bf16.mxu0 %v3801_v32  ;;  %v3848_v32 = vld [vmem:[#allocation7 + $0x320] sm:$0xff]  }
 0x1e9   :  { %3492 = vmatpush3.bf16.msra.mxu1 %v3800_v33  ;;  %v3851_v33 = vld [vmem:[#allocation7 + $0x358] sm:$0xff]  }
 0x1ea   :  { %2771 = vmatmul.mubr.bf16.vlgmr.msra.gmra.mxu0 %v1095_v38  ;;  %3521 = vmatprep.subr.bf16.mxu1 %v3803_v35  ;;  %v3853_v35 = vld [vmem:[#allocation7 + $0x3d8] sm:$0xff]  }
 0x1eb   :  { %3500 = vmatpush3.bf16.msra.mxu0 %v3802_v36  ;;  %2850 = vmatprep.mubr.bf16.mxu0 %v1100_v40  ;;  %v3852_v36 = vld [vmem:[#allocation7 + $0x318] sm:$0xff]   ;;  %v3856_v40 = vld [vmem:[#allocation7 + $0x310] sm:$0xff]  }
 0x1ec   :  { %2811 = vmatmul.mubr.bf16.vlgmr.msra.gmra.mxu1 %v1097_v41  ;;  %3501 = vmatprep.subr.bf16.mxu0 %v3806_v39  ;;  %v3854_v38 = vld [vmem:[#allocation7 + $0x398] sm:$0xff]   ;;  %v3857_v39 = vld [vmem:[#allocation7 + $0x3d0] sm:$0xff]   ;;  %v957_v41 = vld [vmem:[#allocation2 + $0x20] sm:$0xff] }
 0x1ed   :  { %3522 = vmatpush3.bf16.msra.mxu1 %v3804_v3  ;;  %2890 = vmatprep.mubr.bf16.mxu1 %v1102_v43  ;;  %v3859_v3 = vld [vmem:[#allocation7 + $0x348] sm:$0xff]  }
 0x1ee   :  { %3523 = vmatprep.subr.bf16.mxu1 %v3808_v42  ;;  %v3858_v42 = vld [vmem:[#allocation7 + $0x390] sm:$0xff]   ;;  %v3861_v43 = vld [vmem:[#allocation7 + $0x3c8] sm:$0xff]  }
 0x1ef   :  { %3502 = vmatpush3.bf16.msra.mxu0 %v3807_v44  ;;  %v3860_v44 = vld [vmem:[#allocation7 + $0x308] sm:$0xff]  }
 0x1f0   :  { %3503 = vmatprep.subr.bf16.mxu0 %v3810_v45  ;;  %v1033_v45 = vcombine.high %v957_v41, %v957_v41 }
 0x1f1   :  { %3524 = vmatpush3.bf16.msra.mxu1 %v3809_v47  ;;  %v3863_v47 = vld [vmem:[#allocation7 + $0x340] sm:$0xff]  }
 0x1f2   :  { %3525 = vmatprep.subr.bf16.mxu1 %v3812_v48  ;;  %v3862_v48 = vld [vmem:[#allocation7 + $0x388] sm:$0xff]  }
 0x1f3   :  { %3504 = vmatpush3.bf16.msra.mxu0 %v3811_v49  ;;  %v4273_v49 = vrot.slane %v957_v41, %v4230_v31  ;;  %v3907_v41 = vld [vmem:[#allocation7 + $0x5f0] sm:$0xff]  }
 0x1f4   :  { %3505 = vmatprep.subr.bf16.mxu0 %v3814_v50  ;;  %v3865_v50 = vld [vmem:[#allocation7 + $0x3c0] sm:$0xff]  }
 0x1f5   :  { %3526 = vmatpush3.bf16.msra.mxu1 %v3813_v5  ;;  %v3864_v5 = vld [vmem:[#allocation7 + $0x300] sm:$0xff]  }
 0x1f6   :  { %3527 = vmatprep.subr.bf16.mxu1 %v3816_v51  ;;  %v4276_v51 = vrot.slane %v1033_v45, %v4230_v31  ;;  %v3908_v45 = vld [vmem:[#allocation7 + $0x5b0] sm:$0xff]  }
 0x1f7   :  { %3506 = vmatpush3.bf16.msra.mxu0 %v3815_v52  ;;  %v3867_v52 = vld [vmem:[#allocation7 + $0x478] sm:$0xff]  }
 0x1f8   :  { %3507 = vmatprep.subr.bf16.mxu0 %v3818_v53  ;;  %v3866_v53 = vld [vmem:[#allocation7 + $0x380] sm:$0xff]  }
 0x1f9   :  { %3528 = vmatpush3.bf16.msra.mxu1 %v3817_v46  ;;  %v1048_v46 = vcombine.high %v4273_v49, %v4273_v49 }
 0x1fa   :  { %3529 = vmatprep.subr.bf16.mxu1 %v3820_v27  ;;  %v3869_v27 = vld [vmem:[#allocation7 + $0x4f8] sm:$0xff]  }
 0x1fb   :  { %3508 = vmatpush3.bf16.msra.mxu0 %v3819_v54  ;;  %v3868_v54 = vld [vmem:[#allocation7 + $0x438] sm:$0xff]  }
 0x1fc   :  { %3509 = vmatprep.subr.bf16.mxu0 %v3822_v55  ;;  %v1049_v55 = vcombine.high %v4276_v51, %v4276_v51 }
 0x1fd   :  { %3530 = vmatpush3.bf16.msra.mxu1 %v3821_v56  ;;  %v1103_v56 = vpack.c.bf16 %v4259_v4, %v4259_v4  ;;  %v3877_v4 = vld [vmem:[#allocation7 + $0x428] sm:$0xff]  }
 0x1fe   :  { %3531 = vmatprep.subr.bf16.mxu1 %v3824_v57  ;;  %v3872_v57 = vld [vmem:[#allocation7 + $0x470] sm:$0xff]  }
 0x1ff   :  { %3510 = vmatpush3.bf16.msra.mxu0 %v3823_v58  ;;  %v1108_v58 = vpack.c.bf16 %v1048_v46, %v1048_v46  ;;  %v3919_v46 = vld [vmem:[#allocation7 + $0x5d8] sm:$0xff]  }
 0x200   :  { %3511 = vmatprep.subr.bf16.mxu0 %v3826_v59  ;;  %v3870_v59 = vld [vmem:[#allocation7 + $0x4b8] sm:$0xff]  }
 0x201   :  { %3532 = vmatpush3.bf16.msra.mxu1 %v3825_v61  ;;  %v3874_v61 = vld [vmem:[#allocation7 + $0x4f0] sm:$0xff]  }
 0x202   :  { %3533 = vmatprep.subr.bf16.mxu1 %v3828_v62  ;;  %v1110_v62 = vpack.c.bf16 %v1049_v55, %v1049_v55  ;;  %v3920_v55 = vld [vmem:[#allocation7 + $0x598] sm:$0xff]  }
 0x203   :  { %3512 = vmatpush3.bf16.msra.mxu0 %v3827_v63  ;;  %v3873_v63 = vld [vmem:[#allocation7 + $0x430] sm:$0xff]  }
 0x204   :  { %3513 = vmatprep.subr.bf16.mxu0 %v3830_v1  ;;  %v3875_v1 = vld [vmem:[#allocation7 + $0x4b0] sm:$0xff]  }
 0x205   :  { %3534 = vmatpush3.bf16.msra.mxu1 %v3829_v2  ;;  %v3878_v2 = vld [vmem:[#allocation7 + $0x4e8] sm:$0xff]  }
 0x206   :  { %3535 = vmatprep.subr.bf16.mxu1 %v3832_v6  ;;  %v3880_v6 = vld [vmem:[#allocation7 + $0x460] sm:$0xff]  }
 0x207   :  { %3514 = vmatpush3.bf16.msra.mxu0 %v3831_v7  ;;  %v3879_v7 = vld [vmem:[#allocation7 + $0x4a8] sm:$0xff]  }
 0x208   :  { %3543 = vmatprep.subr.bf16.mxu0 %v3834_v9  ;;  %v3881_v9 = vld [vmem:[#allocation7 + $0x420] sm:$0xff]  }
 0x209   :  { %3536 = vmatpush3.bf16.msra.mxu1 %v3833_v10  ;;  %v3884_v10 = vld [vmem:[#allocation7 + $0x458] sm:$0xff]  }
 0x20a   :  { %2851 = vmatmul.mubr.bf16.vlgmr.msra.gmra.mxu0 %v1099_v15  ;;  %3565 = vmatprep.subr.bf16.mxu1 %v3836_v12  ;;  %v3886_v12 = vld [vmem:[#allocation7 + $0x4d8] sm:$0xff]  }
 0x20b   :  { %3544 = vmatpush3.bf16.msra.mxu0 %v3835_v13  ;;  %2930 = vmatprep.mubr.bf16.mxu0 %v1104_v17  ;;  %v3885_v13 = vld [vmem:[#allocation7 + $0x418] sm:$0xff]   ;;  %v3889_v17 = vld [vmem:[#allocation7 + $0x410] sm:$0xff]  }
 0x20c   :  { %2891 = vmatmul.mubr.bf16.vlgmr.msra.gmra.mxu1 %v1101_v19  ;;  %3545 = vmatprep.subr.bf16.mxu0 %v3839_v16  ;;  %v3887_v15 = vld [vmem:[#allocation7 + $0x498] sm:$0xff]   ;;  %v3890_v16 = vld [vmem:[#allocation7 + $0x4d0] sm:$0xff]  }
 0x20d   :  { %3566 = vmatpush3.bf16.msra.mxu1 %v3837_v18  ;;  %2970 = vmatprep.mubr.bf16.mxu1 %v1106_v21  ;;  %v3892_v18 = vld [vmem:[#allocation7 + $0x448] sm:$0xff]  }
 0x20e   :  { %3567 = vmatprep.subr.bf16.mxu1 %v3841_v20  ;;  %v958_v19 = vld [vmem:[#allocation2 + $0x28] sm:$0xff] }
 0x20f   :  { %3546 = vmatpush3.bf16.msra.mxu0 %v3840_v22  ;;  %v3891_v20 = vld [vmem:[#allocation7 + $0x490] sm:$0xff]   ;;  %v3894_v21 = vld [vmem:[#allocation7 + $0x4c8] sm:$0xff]  }
 0x210   :  { %3547 = vmatprep.subr.bf16.mxu0 %v3843_v23  ;;  %v3893_v22 = vld [vmem:[#allocation7 + $0x408] sm:$0xff]   ;;  %v1050_v23 = vcombine.high %v958_v19, %v958_v19 }
 0x211   :  { %3568 = vmatpush3.bf16.msra.mxu1 %v3842_v24  ;;  %v3896_v24 = vld [vmem:[#allocation7 + $0x440] sm:$0xff]  }
 0x212   :  { %3569 = vmatprep.subr.bf16.mxu1 %v3845_v25  ;;  %v3895_v25 = vld [vmem:[#allocation7 + $0x488] sm:$0xff]  }
 0x213   :  { %3548 = vmatpush3.bf16.msra.mxu0 %v3844_v26  ;;  %v4287_v26 = vrot.slane %v958_v19, %v4230_v31 }
 0x214   :  { %3549 = vmatprep.subr.bf16.mxu0 %v3847_v28  ;;  %v3898_v28 = vld [vmem:[#allocation7 + $0x4c0] sm:$0xff]  }
 0x215   :  { %3570 = vmatpush3.bf16.msra.mxu1 %v3846_v29  ;;  %v3897_v29 = vld [vmem:[#allocation7 + $0x400] sm:$0xff]  }
 0x216   :  { %3571 = vmatprep.subr.bf16.mxu1 %v3849_v30  ;;  %v4290_v30 = vrot.slane %v1050_v23, %v4230_v31  ;;  %v3905_v31 = vld [vmem:[#allocation7 + $0x570] sm:$0xff]  }
 0x217   :  { %3550 = vmatpush3.bf16.msra.mxu0 %v3848_v32  ;;  %v3900_v32 = vld [vmem:[#allocation7 + $0x578] sm:$0xff]  }
 0x218   :  { %3551 = vmatprep.subr.bf16.mxu0 %v3851_v33  ;;  %v3899_v33 = vld [vmem:[#allocation7 + $0x480] sm:$0xff]  }
 0x219   :  { %3572 = vmatpush3.bf16.msra.mxu1 %v3850_v34  ;;  %v1065_v34 = vcombine.high %v4287_v26, %v4287_v26 }
 0x21a   :  { %3573 = vmatprep.subr.bf16.mxu1 %v3853_v35  ;;  %v3902_v35 = vld [vmem:[#allocation7 + $0x5f8] sm:$0xff]  }
 0x21b   :  { %3552 = vmatpush3.bf16.msra.mxu0 %v3852_v36  ;;  %v3901_v36 = vld [vmem:[#allocation7 + $0x538] sm:$0xff]  }
 0x21c   :  { %3553 = vmatprep.subr.bf16.mxu0 %v3855_v37  ;;  %v1066_v37 = vcombine.high %v4290_v30, %v4290_v30 }
 0x21d   :  { %3574 = vmatpush3.bf16.msra.mxu1 %v3854_v38  ;;  %v1107_v38 = vpack.c.bf16 %v4273_v49, %v4273_v49  ;;  %v3913_v49 = vld [vmem:[#allocation7 + $0x560] sm:$0xff]  }
 0x21e   :  { %3575 = vmatprep.subr.bf16.mxu1 %v3857_v39  ;;  %v1112_v39 = vpack.c.bf16 %v1065_v34, %v1065_v34 }
 0x21f   :  { %3554 = vmatpush3.bf16.msra.mxu0 %v3856_v40  ;;  %v3903_v40 = vld [vmem:[#allocation7 + $0x5b8] sm:$0xff]  }
 0x220   :  { %3555 = vmatprep.subr.bf16.mxu0 %v3859_v3  ;;  %v1109_v3 = vpack.c.bf16 %v4276_v51, %v4276_v51  ;;  %v3914_v51 = vld [vmem:[#allocation7 + $0x520] sm:$0xff]  }
 0x221   :  { %3576 = vmatpush3.bf16.msra.mxu1 %v3858_v42  ;;  %v1114_v42 = vpack.c.bf16 %v1066_v37, %v1066_v37 }
 0x222   :  { %3577 = vmatprep.subr.bf16.mxu1 %v3861_v43  ;;  %v3906_v43 = vld [vmem:[#allocation7 + $0x530] sm:$0xff]  }
 0x223   :  { %3556 = vmatpush3.bf16.msra.mxu0 %v3860_v44  ;;  %v3909_v44 = vld [vmem:[#allocation7 + $0x568] sm:$0xff]  }
 0x224   :  { %3557 = vmatprep.subr.bf16.mxu0 %v3863_v47  ;;  %v3911_v47 = vld [vmem:[#allocation7 + $0x5e8] sm:$0xff]  }
 0x225   :  { %3578 = vmatpush3.bf16.msra.mxu1 %v3862_v48  ;;  %v3910_v48 = vld [vmem:[#allocation7 + $0x528] sm:$0xff]  }
 0x226   :  { %3579 = vmatprep.subr.bf16.mxu1 %v3865_v50  ;;  %v3912_v50 = vld [vmem:[#allocation7 + $0x5a8] sm:$0xff]  }
 0x227   :  { %3558 = vmatpush3.bf16.msra.mxu0 %v3864_v5  ;;  %v3915_v5 = vld [vmem:[#allocation7 + $0x5e0] sm:$0xff]  }
 0x228   :  { %3587 = vmatprep.subr.bf16.mxu0 %v3867_v52  ;;  %v3917_v52 = vld [vmem:[#allocation7 + $0x558] sm:$0xff]  }
 0x229   :  { %3580 = vmatpush3.bf16.msra.mxu1 %v3866_v53  ;;  %v3916_v53 = vld [vmem:[#allocation7 + $0x5a0] sm:$0xff]  }
 0x22a   :  { %2931 = vmatmul.mubr.bf16.vlgmr.msra.gmra.mxu0 %v1103_v56  ;;  %3609 = vmatprep.subr.bf16.mxu1 %v3869_v27  ;;  %v3918_v27 = vld [vmem:[#allocation7 + $0x518] sm:$0xff]   ;;  %v3923_v56 = vld [vmem:[#allocation7 + $0x5d0] sm:$0xff]  }
 0x22b   :  { %3588 = vmatpush3.bf16.msra.mxu0 %v3868_v54  ;;  %3010 = vmatprep.mubr.bf16.mxu0 %v1108_v58  ;;  %v3921_v54 = vld [vmem:[#allocation7 + $0x550] sm:$0xff]   ;;  %v3925_v58 = vld [vmem:[#allocation7 + $0x548] sm:$0xff]  }
 0x22c   :  { %2971 = vmatmul.mubr.bf16.vlgmr.msra.gmra.mxu1 %v1105_v60  ;;  %3589 = vmatprep.subr.bf16.mxu0 %v3872_v57  ;;  %v3922_v57 = vld [vmem:[#allocation7 + $0x510] sm:$0xff]   ;;  %v3927_v60 = vld [vmem:[#allocation7 + $0x5c8] sm:$0xff]  }
 0x22d   :  { %3610 = vmatpush3.bf16.msra.mxu1 %v3870_v59  ;;  %3050 = vmatprep.mubr.bf16.mxu1 %v1110_v62  ;;  %v3924_v59 = vld [vmem:[#allocation7 + $0x590] sm:$0xff]   ;;  %v3929_v62 = vld [vmem:[#allocation7 + $0x540] sm:$0xff]  }
 0x22e   :  { %3611 = vmatprep.subr.bf16.mxu1 %v3874_v61  ;;  %v3926_v61 = vld [vmem:[#allocation7 + $0x508] sm:$0xff]  }
 0x22f   :  { %3590 = vmatpush3.bf16.msra.mxu0 %v3873_v63  ;;  %v3928_v63 = vld [vmem:[#allocation7 + $0x588] sm:$0xff]  }
 0x230   :  { %3591 = vmatprep.subr.bf16.mxu0 %v3876_v0  ;;  %v3931_v0 = vld [vmem:[#allocation7 + $0x5c0] sm:$0xff]  }
 0x231   :  { %3612 = vmatpush3.bf16.msra.mxu1 %v3875_v1  ;;  %v3930_v1 = vld [vmem:[#allocation7 + $0x500] sm:$0xff]  }
 0x232   :  { %3613 = vmatprep.subr.bf16.mxu1 %v3878_v2  ;;  %v3932_v2 = vld [vmem:[#allocation7 + $0x580] sm:$0xff]  }
 0x233   :  { %3592 = vmatpush3.bf16.msra.mxu0 %v3877_v4  ;;  %v1111_v4 = vpack.c.bf16 %v4287_v26, %v4287_v26 }
 0x234   :  { %3593 = vmatprep.subr.bf16.mxu0 %v3880_v6  ;;  %v1113_v6 = vpack.c.bf16 %v4290_v30, %v4290_v30 }
 0x235   :  { %3614 = vmatpush3.bf16.msra.mxu1 %v3879_v7 }
 0x236   :  { %3615 = vmatprep.subr.bf16.mxu1 %v3882_v8  ;;  %v3205_v8 = vld [vmem:[%s4314_s4] ss:$0 sm:$0xff]  ;;  %s4034_s4 = smov [#allocation9]  }
 0x237   :  { %3594 = vmatpush3.bf16.msra.mxu0 %v3881_v9  ;;  %s3153_s19 = sshll.u32 %s4034_s4, 4  ;;  %s3154_s19 = int_to_ptr.vmem [resolvable:$true] %s3153_s19 }
 0x238   :  { %3595 = vmatprep.subr.bf16.mxu0 %v3884_v10  ;;  %s3989_s20 = scalar_lea.vmem %s3154_s19, 32  ;;  %p3994_p11 = scmp.lt.s32.totalorder %s3154_s19, %s3154_s19 }
 0x239   :  { %3616 = vmatpush3.bf16.msra.mxu1 %v3883_v11  ;;  %p3990_p10 = scmp.ne.s32.totalorder %s3154_s19, %s3989_s20  ;;  %p3995_p12 = scmp.lt.s32.totalorder %s3989_s20, %s3989_s20 }
 0x23a   :  { %3617 = vmatprep.subr.bf16.mxu1 %v3886_v12 }
 0x23b   :  { %3596 = vmatpush3.bf16.msra.mxu0 %v3885_v13  ;;  %p3996_p13 = por %p3995_p12, %p3994_p11 }
 0x23c   :  { %3597 = vmatprep.subr.bf16.mxu0 %v3888_v14 }
 0x23d   :  { %3618 = vmatpush3.bf16.msra.mxu1 %v3887_v15  ;;  %p3997_p0 = pnand %p3996_p13, %p3990_p10 }
 0x23e   :  { %3619 = vmatprep.subr.bf16.mxu1 %v3890_v16 }
 0x23f   :  { %3598 = vmatpush3.bf16.msra.mxu0 %v3889_v17 }
 0x240   :  { %3599 = vmatprep.subr.bf16.mxu0 %v3892_v18 }
 0x241   :  { %3620 = vmatpush3.bf16.msra.mxu1 %v3891_v20 }
 0x242   :  { %3621 = vmatprep.subr.bf16.mxu1 %v3894_v21 }
 0x243   :  { %3600 = vmatpush3.bf16.msra.mxu0 %v3893_v22 }
 0x244   :  { %3601 = vmatprep.subr.bf16.mxu0 %v3896_v24 }
 0x245   :  { %3622 = vmatpush3.bf16.msra.mxu1 %v3895_v25 }
 0x246   :  { %3623 = vmatprep.subr.bf16.mxu1 %v3898_v28 }
 0x247   :  { %3602 = vmatpush3.bf16.msra.mxu0 %v3897_v29 }
 0x248   :  { %3631 = vmatprep.subr.bf16.mxu0 %v3900_v32 }
 0x249   :  { %3624 = vmatpush3.bf16.msra.mxu1 %v3899_v33 }
 0x24a   :  { %3011 = vmatmul.mubr.bf16.vlgmr.msra.gmra.mxu0 %v1107_v38  ;;  %3653 = vmatprep.subr.bf16.mxu1 %v3902_v35 }
 0x24b   :  { %3632 = vmatpush3.bf16.msra.mxu0 %v3901_v36  ;;  %3090 = vmatprep.mubr.bf16.mxu0 %v1112_v39 }
 0x24c   :  { %3051 = vmatmul.mubr.bf16.vlgmr.msra.gmra.mxu1 %v1109_v3  ;;  %3633 = vmatprep.subr.bf16.mxu0 %v3905_v31 }
 0x24d   :  { %3654 = vmatpush3.bf16.msra.mxu1 %v3903_v40  ;;  %3130 = vmatprep.mubr.bf16.mxu1 %v1114_v42 }
 0x24e   :  { %3655 = vmatprep.subr.bf16.mxu1 %v3907_v41 }
 0x24f   :  { %3634 = vmatpush3.bf16.msra.mxu0 %v3906_v43 }
 0x250   :  { %3635 = vmatprep.subr.bf16.mxu0 %v3909_v44 }
 0x251   :  { %3656 = vmatpush3.bf16.msra.mxu1 %v3908_v45 }
 0x252   :  { %3657 = vmatprep.subr.bf16.mxu1 %v3911_v47 }
 0x253   :  { %3636 = vmatpush3.bf16.msra.mxu0 %v3910_v48 }
 0x254   :  { %3637 = vmatprep.subr.bf16.mxu0 %v3913_v49 }
 0x255   :  { %3658 = vmatpush3.bf16.msra.mxu1 %v3912_v50 }
 0x256   :  { %3659 = vmatprep.subr.bf16.mxu1 %v3915_v5 }
 0x257   :  { %3638 = vmatpush3.bf16.msra.mxu0 %v3914_v51 }
 0x258   :  { %3639 = vmatprep.subr.bf16.mxu0 %v3917_v52 }
 0x259   :  { %3660 = vmatpush3.bf16.msra.mxu1 %v3916_v53 }
 0x25a   :  { %3661 = vmatprep.subr.bf16.mxu1 %v3919_v46 }
 0x25b   :  { %3640 = vmatpush3.bf16.msra.mxu0 %v3918_v27 }
 0x25c   :  { %3641 = vmatprep.subr.bf16.mxu0 %v3921_v54 }
 0x25d   :  { %3662 = vmatpush3.bf16.msra.mxu1 %v3920_v55 }
 0x25e   :  { %3663 = vmatprep.subr.bf16.mxu1 %v3923_v56 }
 0x25f   :  { %3642 = vmatpush3.bf16.msra.mxu0 %v3922_v57 }
 0x260   :  { %3643 = vmatprep.subr.bf16.mxu0 %v3925_v58 }
 0x261   :  { %3664 = vmatpush3.bf16.msra.mxu1 %v3924_v59 }
 0x262   :  { %3665 = vmatprep.subr.bf16.mxu1 %v3927_v60 }
 0x263   :  { %3644 = vmatpush3.bf16.msra.mxu0 %v3926_v61 }
 0x264   :  { %3645 = vmatprep.subr.bf16.mxu0 %v3929_v62 }
 0x265   :  { %3666 = vmatpush3.bf16.msra.mxu1 %v3928_v63 }
 0x266   :  { %3667 = vmatprep.subr.bf16.mxu1 %v3931_v0 }
 0x267   :  { %3646 = vmatpush3.bf16.msra.mxu0 %v3930_v1 }
 0x269   :  { %3668 = vmatpush3.bf16.msra.mxu1 %v3932_v2 }
 0x26a   :  { %3091 = vmatmul.mubr.bf16.vlgmr.msra.gmra.mxu0 %v1111_v4 }
 0x26c   :  { %3131 = vmatmul.mubr.bf16.vlgmr.msra.gmra.mxu1 %v1113_v6 }
 0x28a   :  { %v3427_v7 = vpop.f32.mrf.mxu0 }
 0x28c   :  { %v3428_v9 = vpop.f32.mrf.mxu0  ;;  %v3449_v10 = vpop.f32.mrf.mxu1 }
 0x28d   :  { %v3429_v11 = vadd.f32 %v3428_v9, %v3427_v7 }
 0x28e   :  { %v3430_v12 = vpop.f32.mrf.mxu0  ;;  %v3450_v13 = vpop.f32.mrf.mxu1 }
 0x28f   :  { %v2693_v14 = vadd.f32 %v3429_v11, %v3205_v8  ;;  %v3451_v15 = vadd.f32 %v3450_v13, %v3449_v10 }
 0x290   :  { %v3431_v16 = vpop.f32.mrf.mxu0  ;;  %v3452_v17 = vpop.f32.mrf.mxu1 }
 0x291   :  { %v2733_v18 = vadd.f32 %v3451_v15, %v2693_v14 }
 0x292   :  { %v3453_v19 = vpop.f32.mrf.mxu1 }
 0x2aa   :  { %v3471_v20 = vpop.f32.mrf.mxu0 }
 0x2ac   :  { %v3472_v21 = vpop.f32.mrf.mxu0  ;;  %v3493_v22 = vpop.f32.mrf.mxu1 }
 0x2ad   :  { %v3473_v23 = vadd.f32 %v3472_v21, %v3471_v20 }
 0x2ae   :  { %v3474_v24 = vpop.f32.mrf.mxu0  ;;  %v3494_v25 = vpop.f32.mrf.mxu1 }
 0x2af   :  { %v2773_v26 = vadd.f32 %v3473_v23, %v2733_v18  ;;  %v3495_v28 = vadd.f32 %v3494_v25, %v3493_v22 }
 0x2b0   :  { %v3475_v29 = vpop.f32.mrf.mxu0  ;;  %v3496_v30 = vpop.f32.mrf.mxu1 }
 0x2b1   :  { %v2813_v32 = vadd.f32 %v3495_v28, %v2773_v26 }
 0x2b2   :  { %v3497_v33 = vpop.f32.mrf.mxu1 }
 0x2ca   :  { %v3515_v34 = vpop.f32.mrf.mxu0 }
 0x2cc   :  { %v3516_v35 = vpop.f32.mrf.mxu0  ;;  %v3537_v36 = vpop.f32.mrf.mxu1 }
 0x2cd   :  { %v3517_v37 = vadd.f32 %v3516_v35, %v3515_v34 }
 0x2ce   :  { %v3518_v38 = vpop.f32.mrf.mxu0  ;;  %v3538_v31 = vpop.f32.mrf.mxu1 }
 0x2cf   :  { %v2853_v39 = vadd.f32 %v3517_v37, %v2813_v32  ;;  %v3539_v40 = vadd.f32 %v3538_v31, %v3537_v36 }
 0x2d0   :  { %v3519_v3 = vpop.f32.mrf.mxu0  ;;  %v3540_v41 = vpop.f32.mrf.mxu1 }
 0x2d1   :  { %v2893_v42 = vadd.f32 %v3539_v40, %v2853_v39 }
 0x2d2   :  { %v3541_v43 = vpop.f32.mrf.mxu1 }
 0x2ea   :  { %v3559_v44 = vpop.f32.mrf.mxu0 }
 0x2ec   :  { %v3560_v45 = vpop.f32.mrf.mxu0  ;;  %v3581_v47 = vpop.f32.mrf.mxu1 }
 0x2ed   :  { %v3561_v58 = vadd.f32 %v3560_v45, %v3559_v44 }
 0x2ee   :  { %v3562_v48 = vpop.f32.mrf.mxu0  ;;  %v3582_v49 = vpop.f32.mrf.mxu1 }
 0x2ef   :  { %v2933_v59 = vadd.f32 %v3561_v58, %v2893_v42  ;;  %v3583_v60 = vadd.f32 %v3582_v49, %v3581_v47 }
 0x2f0   :  { %v3563_v50 = vpop.f32.mrf.mxu0  ;;  %v3584_v5 = vpop.f32.mrf.mxu1 }
 0x2f1   :  { %v2973_v62 = vadd.f32 %v3583_v60, %v2933_v59 }
 0x2f2   :  { %v3585_v51 = vpop.f32.mrf.mxu1 }
 0x30a   :  { %v3603_v52 = vpop.f32.mrf.mxu0 }
 0x30c   :  { %v3604_v53 = vpop.f32.mrf.mxu0  ;;  %v3625_v46 = vpop.f32.mrf.mxu1 }
 0x30d   :  { %v3605_v61 = vadd.f32 %v3604_v53, %v3603_v52 }
 0x30e   :  { %v3606_v27 = vpop.f32.mrf.mxu0  ;;  %v3626_v54 = vpop.f32.mrf.mxu1 }
 0x30f   :  { %v3013_v63 = vadd.f32 %v3605_v61, %v2973_v62  ;;  %v3627_v0 = vadd.f32 %v3626_v54, %v3625_v46 }
 0x310   :  { %v3607_v55 = vpop.f32.mrf.mxu0  ;;  %v3628_v56 = vpop.f32.mrf.mxu1 }
 0x311   :  { %v3053_v6 = vadd.f32 %v3627_v0, %v3013_v63 }
 0x312   :  { %v3629_v57 = vpop.f32.mrf.mxu1 }
 0x32a   :  { %v3647_v1 = vpop.f32.mrf.mxu0 }
 0x32c   :  { %v3648_v2 = vpop.f32.mrf.mxu0  ;;  %v3669_v4 = vpop.f32.mrf.mxu1 }
 0x32d   :  { %v3649_v7 = vadd.f32 %v3648_v2, %v3647_v1 }
 0x32e   :  { %v3650_v8 = vpop.f32.mrf.mxu0  ;;  %v3670_v9 = vpop.f32.mrf.mxu1 }
 0x32f   :  { %v3093_v10 = vadd.f32 %v3649_v7, %v3053_v6  ;;  %v3671_v11 = vadd.f32 %v3670_v9, %v3669_v4 }
 0x330   :  { %v3651_v12 = vpop.f32.mrf.mxu0  ;;  %v3672_v13 = vpop.f32.mrf.mxu1 }
 0x331   :  { %v3133_v14 = vadd.f32 %v3671_v11, %v3093_v10 }
 0x332   :  { %v3673_v15 = vpop.f32.mrf.mxu1 }
 0x333   :  { %v3138_v16 = vadd.f32 0.5, %v3133_v14 }
 0x335   :  { %v3140_v17 = vmin.f32 %v3138_v16, 0.0  ;;  %vm3139_vm2 = vcmp.gt.f32.partialorder %v3138_v16, 0.0 }
 0x337   :  { %v3141_v18 = vmul.f32 1.442695, %v3140_v17 }
 0x339   :  { %3945 = vpow2.f32 %v3141_v18 }
 0x346   :  { %v3946_v19 = vpop.eup %3945 }
 0x347   :  { %v3398_v20 = vadd.f32 -1.0, %v3946_v19 }
 0x349   :  { %v3144_v21 = vsel %vm3139_vm2, %v3138_v16, %v3398_v20 }
 0x34a   :  { %v3145_v22 = vadd.f32 1.0, %v3144_v21 }
 0x34c   :  { %3146 = vst [vmem:[#allocation9] sm:$0x3] %v3145_v22 }
 0x34d   :  { %4000 = shalt.err (!%p3997_p0)
}
 0x34e   :  { %3156 = dma.vmem_to_hbm [thread:$0]  %s3154_s19, 32, %s4315_s5, [#allocation6]  }
 0x34f   :  { %4013 = dma.done.wait [#allocation6], 32  }
 0x350   :  { %4014 = vsyncadd [#allocation6], 4294967264 }
 0x351   :  { %3160 = vsyncpa [#allocation5], 1 }
 0x352   :  { %3161 = vsyncpa [#allocation8], 1 }
 0x353   :  { %3162 = vsyncpa [#allocation6], 1 }

</bundles_post_ra>
